<compile_context>
chip_gen: v5e
topology: v5e:2x2
jax: 0.10.0
libtpu: 0.0.40
codegen_flags: <defaults>
</compile_context>

<pallas_src>
import math

import jax
import jax.numpy as jnp
from jax import lax
from jax.experimental import pallas as pl
from jax.experimental.pallas import tpu as pltpu


def _round_up(n, m):
    return ((n + m - 1) // m) * m


def _pad_to(x, shape):
    return jnp.pad(x, [(0, t - s) for s, t in zip(x.shape, shape)])


def _gsr_kernel(w1_ref, w2_ref, ut_ref, x_ref, adj_ref, xout_ref):
    hr_p = adj_ref.shape[-1]

    # a = W @ [I; I]  ==  column-block fold of the weights.  The two halves
    # arrive pre-split and lane-padded from the wrapper, so this is a clean
    # full-vreg add (no mid-vreg lane slice).                  -> (hr_p, lr_p)
    a = w1_ref[...] + w2_ref[...]

    # b = a @ U^T.  U^T was formed in the wrapper, so the MXU gets an
    # untransposed RHS (no in-kernel vxpose).                  -> (hr_p, lr_p)
    b = jnp.dot(a, ut_ref[0], preferred_element_type=jnp.float32)

    # f_d = |b @ X|                                            -> (hr_p, hr_p)
    f_d = jnp.abs(jnp.dot(b, x_ref[0], preferred_element_type=jnp.float32))

    rows = lax.broadcasted_iota(jnp.int32, (hr_p, hr_p), 0)
    cols = lax.broadcasted_iota(jnp.int32, (hr_p, hr_p), 1)
    diag = rows == cols

    # fill_diagonal_(1).  Padded rows/cols of f_d are exactly zero, and the
    # extra 1s this places on the padded diagonal can never reach the valid
    # hr x hr block of M below (adj[i, k] == 0 for valid i and padded k).
    adj = jnp.where(diag, jnp.float32(1.0), f_d)
    adj_ref[0] = adj.astype(adj_ref.dtype)

    # M = adj @ adj^T.  NOTE: the reference's (M + M^T)/2 and abs(M) are exact
    # no-ops ONLY because adj >= 0 (abs + diag fill) and the MXU reduces over
    # k in the same order for m[i, j] and m[j, i].  If the diag fill or the
    # abs on f_d is ever removed, reinstate the symmetrize/abs here.
    m = lax.dot_general(adj, adj, (((1,), (1,)), ((), ())),
                        preferred_element_type=jnp.float32)
    m = jnp.where(diag, jnp.float32(1.0), m)
    xout_ref[0] = m.astype(xout_ref.dtype)


@jax.jit
def gsr_layer_pallas(A, X, weights):
    """GSRLayer.forward(A, X) -> (adj, abs(X_sr)).

    A:       (lr, lr) or (B, lr, lr) float32 LR adjacency (upper triangle used)
    X:       (lr, hr) or (B, lr, hr) float32 node embeddings
    weights: (hr, hr) float32, hr == 2 * lr
    """
    single = (A.ndim == 2)
    if single:
        A = A[None]
        X = X[None]
    B, lr_dim, _ = A.shape
    hr_dim = weights.shape[0]
    assert hr_dim == 2 * lr_dim, "GSRLayer assumes hr_dim == 2 * lr_dim"

    # torch.linalg.eigh(lr, UPLO='U'): use the upper triangle of A.
    # TODO(synk): eigh has no Pallas equivalent; computed in plain JAX inside
    # the same jit (eigenvector sign/order may differ from torch).
    a_sym = jnp.triu(A) + jnp.swapaxes(jnp.triu(A, 1), -1, -2)
    _, u_lr = jnp.linalg.eigh(a_sym, symmetrize_input=False)
    u_t = jnp.swapaxes(u_lr, -1, -2)  # feed the MXU an untransposed RHS

    # Lane-dense padding: pad every dim to a multiple of 128 so all stores are
    # unmasked full-lane vsts and all VPU passes use full vregs.
    lr_p = _round_up(lr_dim, 128)
    hr_p = _round_up(hr_dim, 128)

    w1 = _pad_to(weights[:, :lr_dim], (hr_p, lr_p))   # W column-fold, half 1
    w2 = _pad_to(weights[:, lr_dim:], (hr_p, lr_p))   # W column-fold, half 2
    ut_p = _pad_to(u_t, (B, lr_p, lr_p))
    x_p = _pad_to(X, (B, lr_p, hr_p))

    flops = 2 * B * (hr_p * lr_p * lr_p + hr_p * lr_p * hr_p + hr_p * hr_p * hr_p)
    bytes_accessed = 4 * (2 * hr_p * lr_p
                          + B * (lr_p * lr_p + lr_p * hr_p + 2 * hr_p * hr_p))

    adj, x_out = pl.pallas_call(
        _gsr_kernel,
        grid=(B,),
        out_shape=(
            jax.ShapeDtypeStruct((B, hr_p, hr_p), jnp.float32),
            jax.ShapeDtypeStruct((B, hr_p, hr_p), jnp.float32),
        ),
        in_specs=[
            pl.BlockSpec((hr_p, lr_p), lambda b: (0, 0)),        # W[:, :lr]
            pl.BlockSpec((hr_p, lr_p), lambda b: (0, 0)),        # W[:, lr:]
            pl.BlockSpec((1, lr_p, lr_p), lambda b: (b, 0, 0)),  # U^T per graph
            pl.BlockSpec((1, lr_p, hr_p), lambda b: (b, 0, 0)),  # X  per graph
        ],
        out_specs=(
            pl.BlockSpec((1, hr_p, hr_p), lambda b: (b, 0, 0)),  # adj
            pl.BlockSpec((1, hr_p, hr_p), lambda b: (b, 0, 0)),  # abs(X_sr)
        ),
        compiler_params=pltpu.CompilerParams(
            dimension_semantics=("parallel",)),
        cost_estimate=pl.CostEstimate(
            flops=flops, transcendentals=0, bytes_accessed=bytes_accessed),
    )(w1, w2, ut_p, x_p)

    adj = adj[:, :hr_dim, :hr_dim]
    x_out = x_out[:, :hr_dim, :hr_dim]
    if single:
        adj = adj[0]
        x_out = x_out[0]
    return adj, x_out


def _gsr_reference(A, X, weights):
    """Pure-JAX transcription of the PyTorch forward (batched)."""
    lr_dim = A.shape[-1]
    hr_dim = weights.shape[0]
    a_sym = jnp.triu(A) + jnp.swapaxes(jnp.triu(A, 1), -1, -2)
    _, u = jnp.linalg.eigh(a_sym, symmetrize_input=False)
    eye = jnp.eye(lr_dim, dtype=weights.dtype)
    s_d = jnp.concatenate([eye, eye], axis=0)                 # (hr, lr)
    a = weights @ s_d                                         # (hr, lr)
    b = jnp.einsum('hl,bkl->bhk', a, u)                       # a @ U^T
    f_d = jnp.abs(jnp.einsum('bhk,bkj->bhj', b, X))
    d = jnp.eye(hr_dim, dtype=bool)
    adj = jnp.where(d, 1.0, f_d)
    m = jnp.einsum('bij,bkj->bik', adj, adj)
    m = (m + jnp.swapaxes(m, -1, -2)) / 2.0
    m = jnp.where(d, 1.0, m)
    return adj, jnp.abs(m)


if __name__ == "__main__":
    lr_dim = 16
    hr_dim = 2 * lr_dim  # 32
    batch = 2

    key = jax.random.PRNGKey(0)
    k_a, k_x, k_w = jax.random.split(key, 3)

    # Symmetric LR adjacency matrices.
    a0 = jax.random.uniform(k_a, (batch, lr_dim, lr_dim), dtype=jnp.float32)
    A = (a0 + jnp.swapaxes(a0, -1, -2)) * 0.5

    # Node embedding matrices.
    X = jax.random.normal(k_x, (batch, lr_dim, hr_dim), dtype=jnp.float32)

    # weight_variable_glorot(hr_dim): uniform(-r, r), r = sqrt(6/(2*hr_dim)).
    init_range = math.sqrt(6.0 / (hr_dim + hr_dim))
    weights = jax.random.uniform(
        k_w, (hr_dim, hr_dim), minval=-init_range, maxval=init_range,
        dtype=jnp.float32)

    adj, feats = gsr_layer_pallas(A, X, weights)
    jax.block_until_ready((adj, feats))

    assert adj.shape == (batch, hr_dim, hr_dim)
    assert feats.shape == (batch, hr_dim, hr_dim)
    assert bool(jnp.all(jnp.isfinite(adj))) and bool(jnp.all(jnp.isfinite(feats)))

    # fill_diagonal_(1) must survive exactly.
    assert bool(jnp.all(jnp.diagonal(adj, axis1=-2, axis2=-1) == 1.0))
    assert bool(jnp.all(jnp.diagonal(feats, axis1=-2, axis2=-1) == 1.0))
    # adj >= 0 and feats symmetric (the invariants the algebraic shortcuts use).
    assert bool(jnp.all(adj >= 0.0))
    assert bool(jnp.allclose(feats, jnp.swapaxes(feats, -1, -2)))

    # Loose numeric check against a pure-JAX transcription of the torch math
    # (loose tolerance: matmul precision inside/outside Pallas may differ).
    adj_ref, feats_ref = _gsr_reference(A, X, weights)
    assert bool(jnp.allclose(adj, adj_ref, rtol=2e-2, atol=2e-2))
    assert bool(jnp.allclose(feats, feats_ref, rtol=2e-2, atol=2e-2))

    # Single-graph (2-D) path, matching the original module API.
    adj0, feats0 = gsr_layer_pallas(A[0], X[0], weights)
    jax.block_until_ready((adj0, feats0))
    assert adj0.shape == (hr_dim, hr_dim) and feats0.shape == (hr_dim, hr_dim)

    print("KERNEL_OK")
</pallas_src>

<mosaic_0001>
module attributes {stable_mosaic.version = 11 : i64} {
  func.func @_gsr_kernel(%arg0: i32, %arg1: memref<128x128xf32, #tpu.memory_space<vmem>>, %arg2: memref<128x128xf32, #tpu.memory_space<vmem>>, %arg3: memref<1x128x128xf32, #tpu.memory_space<vmem>>, %arg4: memref<1x128x128xf32, #tpu.memory_space<vmem>>, %arg5: memref<1x128x128xf32, #tpu.memory_space<vmem>>, %arg6: memref<1x128x128xf32, #tpu.memory_space<vmem>>) attributes {dimension_semantics = [#tpu.dimension_semantics<parallel>], iteration_bounds = array<i64: 2>, scalar_prefetch = 0 : i64, scratch_operands = 0 : i64, tpu.core_type = #tpu.core_type<tc>, window_params = [{pipeline_mode = #tpu.pipeline_mode<synchronous>, transform_indices = @transform_0, window_bounds = array<i64: 128, 128>}, {pipeline_mode = #tpu.pipeline_mode<synchronous>, transform_indices = @transform_1, window_bounds = array<i64: 128, 128>}, {transform_indices = @transform_2, window_bounds = array<i64: 1, 128, 128>}, {transform_indices = @transform_3, window_bounds = array<i64: 1, 128, 128>}, {transform_indices = @transform_4, window_bounds = array<i64: 1, 128, 128>}, {transform_indices = @transform_5, window_bounds = array<i64: 1, 128, 128>}]} {
    %c0 = arith.constant 0 : index
    %c0_0 = arith.constant 0 : index
    %0 = vector.load %arg1[%c0, %c0_0] : memref<128x128xf32, #tpu.memory_space<vmem>>, vector<128x128xf32>
    %c0_1 = arith.constant 0 : index
    %c0_2 = arith.constant 0 : index
    %1 = vector.load %arg2[%c0_1, %c0_2] : memref<128x128xf32, #tpu.memory_space<vmem>>, vector<128x128xf32>
    %2 = arith.addf %0, %1 : vector<128x128xf32>
    %c0_3 = arith.constant 0 : index
    %c0_4 = arith.constant 0 : index
    %c0_5 = arith.constant 0 : index
    %3 = vector.load %arg3[%c0_3, %c0_4, %c0_5] : memref<1x128x128xf32, #tpu.memory_space<vmem>>, vector<1x128x128xf32>
    %4 = vector.shape_cast %3 : vector<1x128x128xf32> to vector<128x128xf32>
    %cst = arith.constant dense<0.000000e+00> : vector<128x128xf32>
    %5 = tpu.matmul %2, %4, %cst {dimension_numbers = #tpu.dot_dimension_numbers<[1], [0], [0], [1], [0, 0, 1, 1], [], []>} : vector<128x128xf32>, vector<128x128xf32>, vector<128x128xf32> -> vector<128x128xf32>
    %c0_6 = arith.constant 0 : index
    %c0_7 = arith.constant 0 : index
    %c0_8 = arith.constant 0 : index
    %6 = vector.load %arg4[%c0_6, %c0_7, %c0_8] : memref<1x128x128xf32, #tpu.memory_space<vmem>>, vector<1x128x128xf32>
    %7 = vector.shape_cast %6 : vector<1x128x128xf32> to vector<128x128xf32>
    %cst_9 = arith.constant dense<0.000000e+00> : vector<128x128xf32>
    %8 = tpu.matmul %5, %7, %cst_9 {dimension_numbers = #tpu.dot_dimension_numbers<[1], [0], [0], [1], [0, 0, 1, 1], [], []>} : vector<128x128xf32>, vector<128x128xf32>, vector<128x128xf32> -> vector<128x128xf32>
    %9 = math.absf %8 : vector<128x128xf32>
    %10 = tpu.iota {dimensions = array<i32: 0>} : vector<128x128xi32>
    %11 = tpu.iota {dimensions = array<i32: 1>} : vector<128x128xi32>
    %12 = arith.cmpi eq, %10, %11 : vector<128x128xi32>
    %cst_10 = arith.constant 1.000000e+00 : f32
    %13 = vector.broadcast %cst_10 : f32 to vector<128x128xf32>
    %14 = arith.select %12, %13, %9 : vector<128x128xi1>, vector<128x128xf32>
    %c0_11 = arith.constant 0 : index
    %c0_12 = arith.constant 0 : index
    %c0_13 = arith.constant 0 : index
    %15 = vector.load %arg5[%c0_11, %c0_12, %c0_13] : memref<1x128x128xf32, #tpu.memory_space<vmem>>, vector<1x128x128xf32>
    %16 = vector.shape_cast %15 : vector<1x128x128xf32> to vector<128x128xf32>
    %17 = vector.shape_cast %14 : vector<128x128xf32> to vector<1x128x128xf32>
    tpu.vector_store %arg5[%c0_11, %c0_12, %c0_13], %17 {strides = array<i32>} : memref<1x128x128xf32, #tpu.memory_space<vmem>>, vector<1x128x128xf32>,
    %cst_14 = arith.constant dense<0.000000e+00> : vector<128x128xf32>
    %18 = tpu.matmul %14, %14, %cst_14 {dimension_numbers = #tpu.dot_dimension_numbers<[1], [1], [0], [0], [0, 0, 1, 0], [], []>} : vector<128x128xf32>, vector<128x128xf32>, vector<128x128xf32> -> vector<128x128xf32>
    %cst_15 = arith.constant 1.000000e+00 : f32
    %19 = vector.broadcast %cst_15 : f32 to vector<128x128xf32>
    %20 = arith.select %12, %19, %18 : vector<128x128xi1>, vector<128x128xf32>
    %c0_16 = arith.constant 0 : index
    %c0_17 = arith.constant 0 : index
    %c0_18 = arith.constant 0 : index
    %21 = vector.load %arg6[%c0_16, %c0_17, %c0_18] : memref<1x128x128xf32, #tpu.memory_space<vmem>>, vector<1x128x128xf32>
    %22 = vector.shape_cast %21 : vector<1x128x128xf32> to vector<128x128xf32>
    %23 = vector.shape_cast %20 : vector<128x128xf32> to vector<1x128x128xf32>
    tpu.vector_store %arg6[%c0_16, %c0_17, %c0_18], %23 {strides = array<i32>} : memref<1x128x128xf32, #tpu.memory_space<vmem>>, vector<1x128x128xf32>,
    return
  }
  func.func @transform_0(%arg0: i32) -> (i32, i32) {
    %c0_i32 = arith.constant 0 : i32
    %c0_i32_0 = arith.constant 0 : i32
    %c0_i32_1 = arith.constant 0 : i32
    return %c0_i32, %c0_i32_0 : i32, i32
  }
  func.func @transform_1(%arg0: i32) -> (i32, i32) {
    %c0_i32 = arith.constant 0 : i32
    %c0_i32_0 = arith.constant 0 : i32
    %c0_i32_1 = arith.constant 0 : i32
    return %c0_i32, %c0_i32_0 : i32, i32
  }
  func.func @transform_2(%arg0: i32) -> (i32, i32, i32) {
    %c0_i32 = arith.constant 0 : i32
    %c0_i32_0 = arith.constant 0 : i32
    %c0_i32_1 = arith.constant 0 : i32
    return %arg0, %c0_i32, %c0_i32_0 : i32, i32, i32
  }
  func.func @transform_3(%arg0: i32) -> (i32, i32, i32) {
    %c0_i32 = arith.constant 0 : i32
    %c0_i32_0 = arith.constant 0 : i32
    %c0_i32_1 = arith.constant 0 : i32
    return %arg0, %c0_i32, %c0_i32_0 : i32, i32, i32
  }
  func.func @transform_4(%arg0: i32) -> (i32, i32, i32) {
    %c0_i32 = arith.constant 0 : i32
    %c0_i32_0 = arith.constant 0 : i32
    %c0_i32_1 = arith.constant 0 : i32
    return %arg0, %c0_i32, %c0_i32_0 : i32, i32, i32
  }
  func.func @transform_5(%arg0: i32) -> (i32, i32, i32) {
    %c0_i32 = arith.constant 0 : i32
    %c0_i32_0 = arith.constant 0 : i32
    %c0_i32_1 = arith.constant 0 : i32
    return %arg0, %c0_i32, %c0_i32_0 : i32, i32, i32
  }
}

</mosaic_0001>

<bundles_post_ra>
// kernel: custom-call.2
= control target key start
LH: loop header
LB: loop body
LE: loop exit
PB: predicated region body
PF: predicated region fallthrough
CT: control target
= control target key end

     0   :  { %s1724_s30 = smov 0   ;;  %s1726_s10 = smov 0   ;;  %s2054_s0 = inlined_call_operand.vmem [shape: f32[2,8,8], index: 0, kind: input, shape index: {}]   ;;  %s2055_s1 = inlined_call_operand.vmem [shape: f32[2,8,8], index: 1, kind: input, shape index: {}]   ;;  %s2056_s2 = inlined_call_operand.vmem [shape: f32[2,8,8], index: 2, kind: input, shape index: {}]   ;;  %s2057_s3 = inlined_call_operand.vmem [shape: f32[2,8,8], index: 3, kind: input, shape index: {}]   ;;  %s2058_s4 = inlined_call_operand.vmem [shape: f32[2,8], index: 4, kind: output, shape index: {0}]   ;;  %s2059_s5 = inlined_call_operand.vmem [shape: f32[2,8], index: 5, kind: output, shape index: {1}]   ;;  %s2060_s6 = inlined_call_operand.vmem [shape: f32[2,8,8], index: 6, kind: output, shape index: {2}]   ;;  %s2061_s7 = inlined_call_operand.vmem [shape: f32[2,8,8], index: 7, kind: output, shape index: {3}]   ;;  %s2062_s8 = inlined_call_operand.vmem [shape: f32[2,8,8], index: 8, kind: output, shape index: {4}]   ;;  %s2063_s9 = inlined_call_operand.vmem [shape: f32[2,8,8], index: 9, kind: output, shape index: {5}]  }
   0x1   :  { %s1728_s11 = smov 0  }
   0x2 LB: > { %s1740_s12 = sadd.s32 4294967295, %s1661_s11   ;;  %s1743_s13 = sadd.s32 1, %s1661_s11   ;;  %s1661_s11 = sphi %s1728_s11, %s2070_s11   ;;  %s1657_s10 = sphi %s1726_s10, %s2069_s10   ;;  %s1653_s30 = sphi %s1724_s30, %s2068_s30  }
   0x3   : > { %s20_s14 = sshrl.u32 %s1661_s11, 3  ;;  %s21_s15 = sshrl.u32 %s1743_s13, 3 }
   0x4   : > { %s22_s16 = ssub.s32 %s20_s14, %s21_s15  ;;  %s25_s17 = sadd.s32 1, %s1657_s10 }
   0x5   : > { %p23_p0 = scmp.eq.s32.totalorder %s22_s16, 0  ;;  %p35_p1 = scmp.ne.s32.totalorder %s1657_s10, %s1653_s30 }
   0x6   : > { %p36_p2 = scmp.eq.s32.totalorder %s1740_s12, 1  ;;  %p1522_p4 = scmp.ge.s32.totalorder %s1661_s11, 2 }
   0x7   : > { %s1752_s18 = scalar_select %p23_p0, %s1657_s10, %s25_s17  }
   0x8   : > { %p1754_p3 = por %p36_p2, %p35_p1  ;;  %86 = sbr.rel (%p1522_p4) target bundleno = 18 (0x12), region = 16 }
   0x9   : > { %2064 = sst [smem:[#allocation25_spill]] %s1752_s18  ;;  %s88_s20 = sand.u32 (!%p1522_p4), 1, %s1661_s11  }
   0xa   : > { %s1524_s21 = sshll.u32 (!%p1522_p4), %s1661_s11, 3  ;;  %s1523_s22 = sshll.u32 (!%p1522_p4), %s88_s20, 3 }
   0xb   : > { %s92_s25 = scalar_lea.vmem (!%p1522_p4), %s2054_s0, %s1524_s21  ;;  %s90_s26 = scalar_lea.vmem (!%p1522_p4), [#allocation0], %s1523_s22 }
   0xc   : > { %s131_s29 = scalar_lea.vmem (!%p1522_p4), %s2055_s1, %s1524_s21  ;;  %s170_s16 = scalar_lea.vmem (!%p1522_p4), %s2056_s2, %s1524_s21 }
   0xd   : > { %v121_v0 = vld [vmem:[%s92_s25] sm:$0xff]  ;;  %s129_s17 = scalar_lea.vmem [#allocation1], %s1523_s22  ;;  %s209_s23 = scalar_lea.vmem %s2057_s3, %s1524_s21 }
   0xe   : > { %122 = vst [vmem:[%s90_s26] sm:$0xff] %v121_v0  ;;  %v160_v1 = vld [vmem:[%s131_s29] sm:$0xff]  ;;  %s168_s24 = scalar_lea.vmem [#allocation2], %s1523_s22  ;;  %s207_s25 = scalar_lea.vmem [#allocation3], %s1523_s22 }
   0xf   : > { %161 = vst [vmem:[%s129_s17] sm:$0xff] %v160_v1  ;;  %v199_v2 = vld [vmem:[%s170_s16] sm:$0xff] }
  0x10   : > { %200 = vst [vmem:[%s168_s24] sm:$0xff] %v199_v2  ;;  %v238_v3 = vld [vmem:[%s209_s23] sm:$0xff] }
  0x11   : > { %239 = vst [vmem:[%s207_s25] sm:$0xff] %v238_v3 }
  0x12 PF: > { %p1531_p5 = scmp.ge.s32.totalorder %s1661_s11, 1  ;;  %p244_p6 = scmp.lt.s32.totalorder %s1661_s11, 3 }
  0x14   : > { %p245_p7 = pnand %p1531_p5, %p244_p6 }
  0x16   : > { %248 = sbr.rel (%p245_p7) target bundleno = 946 (0x3b2), region = 156 }
  0x1b   : > { %s251_s26 = sand.u32 1, %s1740_s12   ;;  %s285_s27 = sand.u32 1, %s1653_s30   ;;  %v329_v4 = vlaneseq  ;;  %v1671_v9 = vmov 0.0  }
  0x1c   : > { %s1777_s28 = sshll.u32 %s251_s26, 3  ;;  %s1779_s18 = sshll.u32 %s285_s27, 1 }
  0x1d   : > { %v1781_v5 = vand.u32 127, %v329_v4  ;;  %v1783_v6 = vshrl.u32 %v329_v4, 7  ;;  %s253_s11 = scalar_lea.vmem [#allocation0], %s1777_s28  ;;  %s257_s21 = scalar_lea.vmem [#allocation1], %s1777_s28 }
  0x1e   : > { %v313_v7 = vld [vmem:[%s253_s11] sm:$0xff]  ;;  %v316_v8 = vld [vmem:[%s257_s21] sm:$0xff]  ;;  %s1788_s30 = scalar_lea.vmem [#allocation8], %s1777_s28  ;;  %s312_s22 = smov [#allocation12] }
  0x1f   : > { %324 = vst [vmem:[%s1788_s30] sm:$0xff] %v1671_v9  ;;  %s315_s29 = smov [#allocation13]  ;;  %s261_s14 = scalar_lea.vmem [#allocation2], %s1777_s28  ;;  %v331_v5 = vmov %v1781_v5  ;;  %v334_v6 = vmov %v1783_v6  ;;  %vm1411_vm2 = vcmp.lt.s32.totalorder %v1781_v5, 8 }
  0x20   : > { %v319_v10 = vld [vmem:[%s261_s14] sm:$0xff]  ;;  %s1793_s15 = scalar_lea.vmem [#allocation9], %s1777_s28  ;;  %314 = vst [vmem:[%s312_s22] sm:$0xff] %v313_v7  ;;  %s318_s16 = smov [#allocation14]  ;;  %vm338_vm0 = vcmp.eq.s32.totalorder %v334_v6, %v331_v5  ;;  %v344_v5 = vmov %v1781_v5  ;;  %v347_v6 = vmov %v1783_v6 }
  0x21   : > { %325 = vst [vmem:[%s1793_s15] sm:$0xff] %v1671_v9  ;;  %s321_s17 = smov [#allocation15]  ;;  %s265_s20 = scalar_lea.vmem [#allocation3], %s1777_s28  ;;  %vm351_vm1 = vcmp.eq.s32.totalorder %v347_v6, %v344_v5  ;;  %v1403_v5 = vmov %v1781_v5  ;;  %v1406_v6 = vmov %v1783_v6 }
  0x22   : > { %v322_v11 = vld [vmem:[%s265_s20] sm:$0xff]  ;;  %317 = vst [vmem:[%s315_s29] sm:$0xff] %v316_v8  ;;  %s328_s30 = smov %s1788_s30  ;;  %s1801_s23 = scalar_lea.vmem [#allocation10], %s1777_s28  ;;  %v1420_v5 = vmov %v1781_v5  ;;  %v1423_v6 = vmov %v1783_v6  ;;  %vm1416_vm3 = vcmp.eq.s32.totalorder %v1406_v6, %v1403_v5 }
  0x23   : > { %320 = vst [vmem:[%s318_s16] sm:$0xff] %v319_v10  ;;  %s1805_s24 = scalar_lea.vmem [#allocation11], %s1777_s28  ;;  %s287_s25 = scalar_lea.vmem [#allocation5], %s1779_s18  ;;  %v1437_v5 = vmov %v1781_v5  ;;  %v1440_v6 = vmov %v1783_v6 }
  0x24   : > { %323 = vst [vmem:[%s321_s17] sm:$0xff] %v322_v11  ;;  %s293_s26 = scalar_lea.vmem [#allocation7], %s1779_s18  ;;  %s1407_s27 = smov [#allocation12]  ;;  %v1454_v5 = vmov %v1781_v5  ;;  %v1457_v6 = vmov %v1783_v6 }
  0x25   : > { %326 = vst [vmem:[%s1801_s23] sm:$0xff] %v1671_v9  ;;  %s1424_s28 = smov [#allocation13]  ;;  %s1441_s11 = smov [#allocation14]  ;;  %vm1467_vm4 = vcmp.eq.s32.totalorder %v1457_v6, %v1454_v5 }
  0x26   : > { %327 = vst [vmem:[%s1805_s24] sm:$0xff] %v1671_v9  ;;  %v335_v12 = vld [vmem:[%s328_s30] sm:$0xff]  ;;  %s341_s24 = smov %s1805_s24  ;;  %s1458_s21 = smov [#allocation15] }
  0x27   : > { %v339_v13 = vsel %vm338_vm0, 1.0, %v335_v12  ;;  %v1413_v16 = vld [vmem:[%s1407_s27] sm:$0xff] }
  0x28   : > { %340 = vst [vmem:[%s328_s30] sm:$0xff] %v339_v13  ;;  %v1414_v18 = vsel %vm1411_vm2, %v1413_v16, 0.0 }
  0x29   : > { %v1430_v17 = vld [vmem:[%s1424_s28] sm:$0xff]  ;;  %v1415_v22 = vmul.f32 %v1414_v18, %v1414_v18 }
  0x2a   : > { %v1431_v19 = vsel %vm1411_vm2, %v1430_v17, 0.0  ;;  %v1447_v20 = vld [vmem:[%s1441_s11] sm:$0xff] }
  0x2b   : > { %v1464_v21 = vld [vmem:[%s1458_s21] sm:$0xff]  ;;  %v1432_v23 = vmul.f32 %v1431_v19, %v1431_v19  ;;  %v1448_v24 = vsel %vm1411_vm2, %v1447_v20, 0.0  ;;  %v1417_v29 = vsel %vm1416_vm3, 0.0, %v1415_v22 }
  0x2c   : > { %v1465_v25 = vsel %vm1411_vm2, %v1464_v21, 0.0  ;;  %v1449_v26 = vmul.f32 %v1448_v24, %v1448_v24 }
  0x2d   : > { %v348_v14 = vld [vmem:[%s341_s24] sm:$0xff]  ;;  %v1434_v27 = vadd.f32 %v1432_v23, %v1415_v22  ;;  %v1466_v28 = vmul.f32 %v1465_v25, %v1465_v25  ;;  %v1433_v31 = vadd.f32 %v1432_v23, %v1417_v29 }
  0x2e   : > { %v352_v15 = vsel %vm351_vm1, 1.0, %v348_v14 }
  0x2f   : > { %353 = vst [vmem:[%s341_s24] sm:$0xff] %v352_v15  ;;  %v1451_v30 = vadd.f32 %v1449_v26, %v1434_v27  ;;  %v1450_v33 = vadd.f32 %v1449_v26, %v1433_v31  ;;  %v1468_v34 = vsel %vm1467_vm4, 0.0, %v1466_v28 }
  0x31   : > { %v1470_v32 = vadd.f32 %v1466_v28, %v1451_v30  ;;  %v1469_v35 = vadd.f32 %v1468_v34, %v1450_v33 }
  0x33   : > { %1471 = vadd.xlane.f32.xlu0 %v1470_v32 }
  0x3b   : > { %1479 = vadd.xlane.f32.xlu0 %v1469_v35 }
  0xa6   : > { %v1472_v36 = vpop.xlane.xlu0 %1471 }
  0xa7   : > { %v1473_v37 = vrot.slane %v1472_v36, 4 }
  0xa9   : > { %v1474_v38 = vadd.f32 %v1473_v37, %v1472_v36 }
  0xab   : > { %v1475_v39 = vrot.slane %v1474_v38, 2 }
  0xad   : > { %v1476_v43 = vadd.f32 %v1475_v39, %v1474_v38 }
  0xae   : > { %v1480_v40 = vpop.xlane.xlu0 %1479 }
  0xaf   : > { %v1481_v41 = vrot.slane %v1480_v40, 4  ;;  %v1477_v46 = vrot.slane %v1476_v43, 1 }
  0xb1   : > { %v1482_v42 = vadd.f32 %v1481_v41, %v1480_v40  ;;  %v1478_v49 = vadd.f32 %v1477_v46, %v1476_v43 }
  0xb3   : > { %v1483_v44 = vrot.slane %v1482_v42, 2 }
  0xb5   : > { %v1484_v45 = vadd.f32 %v1483_v44, %v1482_v42 }
  0xb7   : > { %v1485_v47 = vrot.slane %v1484_v45, 1 }
  0xb9   : > { %v1486_v48 = vadd.f32 %v1485_v47, %v1484_v45 }
  0xbb   : > { %1572 = vpush %v1486_v48 }
  0xbc   : > { %1574 = vpush %v1478_v49 }
  0xec   : > { %s1573_s22 = spop %1572 }
  0xed   : > { %s1575_s29 = spop %1574 }
  0xee   : > { %s1489_s14 = smul.f32 1e-10, %s1575_s29 }
  0xf0   : > { %p1490_p8 = scmp.le.f32.partialorder %s1573_s22, %s1489_s14 }
  0xf1   : > { %s1830_s16 = smov (!%p1490_p8), 0  }
  0xf2   : > { %1493 = sbr.rel (%p1490_p8) target bundleno = 900 (0x384), region = 499 }
  0xf7 LB: >> { %s1835_s17 = smov 0   ;;  %s1665_s16 = sphi %s1830_s16, %s2066_s16  }
  0xf8 LB: >>> { %s458_s20 = smov [#allocation12]  ;;  %v462_v5 = vmov %v1781_v5  ;;  %v465_v6 = vmov %v1783_v6  ;;  %s478_s27 = smov [#allocation13]  ;;  %s1669_s17 = sphi %s1835_s17, %s457_s17  }
  0xf9   : >>> { %v482_v5 = vmov %v1781_v5  ;;  %v485_v6 = vmov %v1783_v6  ;;  %v466_v50 = vld [vmem:[%s458_s20] sm:$0xff]  ;;  %vm469_vm5 = vcmp.eq.s32.totalorder %v465_v6, %v462_v5  ;;  %s498_s28 = smov [#allocation15]  ;;  %s459_s11 = smov [#allocation16] }
  0xfa   : >>> { %vm489_vm6 = vcmp.eq.s32.totalorder %v485_v6, %v482_v5  ;;  %v502_v5 = vmov %v1781_v5  ;;  %v505_v6 = vmov %v1783_v6  ;;  %v470_v51 = vsel %vm469_vm5, %v466_v50, 0.0  ;;  %v486_v52 = vld [vmem:[%s478_s27] sm:$0xff]  ;;  %s479_s21 = smov [#allocation17]  ;;  %s499_s22 = smov [#allocation18] }
  0xfb   : >>> { %vm509_vm7 = vcmp.eq.s32.totalorder %v505_v6, %v502_v5  ;;  %v471_v53 = vrot.slane %v470_v51, 4  ;;  %v490_v54 = vsel %vm489_vm6, %v486_v52, 0.0  ;;  %v506_v55 = vld [vmem:[%s498_s28] sm:$0xff]  ;;  %s522_s29 = smov [#allocation17]  ;;  %s520_s14 = smov [#allocation16]  ;;  %v611_v5 = vmov %v1781_v5 }
  0xfc   : >>> { %v491_v56 = vrot.slane %v490_v54, 4  ;;  %v510_v57 = vsel %vm509_vm7, %v506_v55, 0.0  ;;  %s524_s20 = smov [#allocation18]  ;;  %s599_s27 = smov [#allocation19]  ;;  %v614_v6 = vmov %v1783_v6 }
  0xfd   : >>> { %v472_v58 = vadd.f32 %v471_v53, %v470_v51  ;;  %v511_v59 = vrot.slane %v510_v57, 4  ;;  %s601_s28 = smov [#allocation20]  ;;  %s1862_s30 = smov %s1788_s30 }
  0xfe   : >>> { %v492_v60 = vadd.f32 %v491_v56, %v490_v54  ;;  %s1865_s15 = smov %s1793_s15  ;;  %s1870_s23 = smov %s1801_s23 }
  0xff   : >>> { %v473_v61 = vrot.slane %v472_v58, 2  ;;  %v512_v62 = vadd.f32 %v511_v59, %v510_v57  ;;  %s1875_s24 = smov %s1805_s24  ;;  %s457_s17 = sadd.s32 1, %s1669_s17  }
 0x100   : >>> { %v493_v63 = vrot.slane %v492_v60, 2  ;;  %p454_p9 = scmp.ge.s32.totalorder %s457_s17, 15  }
 0x101   : >>> { %v474_v0 = vadd.f32 %v473_v61, %v472_v58  ;;  %v513_v1 = vrot.slane %v512_v62, 2 }
 0x102   : >>> { %v494_v2 = vadd.f32 %v493_v63, %v492_v60 }
 0x103   : >>> { %v475_v3 = vrot.slane %v474_v0, 1  ;;  %v514_v4 = vadd.f32 %v513_v1, %v512_v62 }
 0x104   : >>> { %v495_v7 = vrot.slane %v494_v2, 1 }
 0x105   : >>> { %v476_v8 = vadd.f32 %v475_v3, %v474_v0  ;;  %v515_v9 = vrot.slane %v514_v4, 1 }
 0x106   : >>> { %v496_v10 = vadd.f32 %v495_v7, %v494_v2 }
 0x107   : >>> { %477 = vst [vmem:[%s459_s11] sm:$0x1] %v476_v8  ;;  %v516_v11 = vadd.f32 %v515_v9, %v514_v4  ;;  %s518_s11 = smov [#allocation21] }
 0x108   : >>> { %497 = vst [vmem:[%s479_s21] sm:$0x1] %v496_v10  ;;  %s519_s21 = smov [#allocation22]  ;;  %s603_s11 = smov %s518_s11 }
 0x109   : >>> { %517 = vst [vmem:[%s499_s22] sm:$0x1] %v516_v11  ;;  %s605_s21 = smov %s519_s21  ;;  %s607_s22 = smov [#allocation21] }
 0x10e   : >>> { %v521_v19 = vld [vmem:[%s520_s14] sm:$0xff]  ;;  %s620_s14 = smov [#allocation23] }
 0x10f   : >>> { %v1846_v12 = vld [vmem:[%s522_s29] sm:$0xff]  ;;  %v575_v43 = vand.u32 2147483647, %v521_v19  ;;  %s622_s29 = smov [#allocation22] }
 0x110   : >>> { %v527_v13 = vmul.f32 2.0, %v1846_v12  ;;  %v525_v20 = vld [vmem:[%s524_s20] sm:$0xff]  ;;  %v576_v51 = vand.u32 2147483647, %v1846_v12  ;;  %s635_s20 = smov [#allocation24] }
 0x111   : >>> { %v526_v23 = vsub.f32 %v525_v20, %v521_v19  ;;  %v577_v44 = vand.u32 2147483647, %v525_v20 }
 0x112   : >>> { %1623 = vrcp.f32 %v527_v13  ;;  %v539_v16 = vand.u32 2147483648, %v527_v13  ;;  %vm533_vm8 = vweird.f32 %v527_v13  ;;  %v537_v18 = vand.u32 2147483647, %v527_v13 }
 0x113   : >>> { %v578_v46 = vmin.f32 %v575_v43, %v577_v44 }
 0x114   : >>> { %v540_v22 = vor.u32 1.1754944e-38, %v539_v16  ;;  %vm538_vm11 = vcmp.eq.f32.partialorder %v537_v18, 8.507059e+37 }
 0x115   : >>> { %v579_v52 = vmul.f32 1.1920929e-08, %v578_v46 }
 0x117   : >>> { %vm580_vm4 = vcmp.le.f32.partialorder %v576_v51, %v579_v52 }
 0x118   : >>> { %v1624_v14 = vpop.eup %1623 }
 0x119   : >>> { %v529_v15 = vmul.f32 %v1624_v14, %v527_v13  ;;  %vm534_vm9 = vweird.f32 %v1624_v14 }
 0x11a   : >>> { %vm535_vm10 = vmor %vm533_vm8, %vm534_vm9  ;;  %vm616_vm8 = vcmp.eq.s32.totalorder %v614_v6, %v611_v5  ;;  %v626_v5 = vmov %v1781_v5  ;;  %v629_v6 = vmov %v1783_v6 }
 0x11b   : >>> { %v530_v17 = vsub.f32 1.0, %v529_v15  ;;  %vm631_vm9 = vcmp.eq.s32.totalorder %v629_v6, %v626_v5  ;;  %v697_v5 = vmov %v1781_v5 }
 0x11c   : >>> { %v738_v5 = vmov %v1781_v5 }
 0x11d   : >>> { %v531_v21 = vmul.f32 %v1624_v14, %v530_v17  ;;  %v724_v5 = vmov %v1781_v5 }
 0x11f   : >>> { %v532_v24 = vadd.f32 %v1624_v14, %v531_v21 }
 0x121   : >>> { %v536_v25 = vsel %vm535_vm10, %v1624_v14, %v532_v24  ;;  %v871_v24 = vld [vmem:[%s1870_s23] sm:$0xff]  ;;  %vm821_vm10 = vcmp.eq.s32.totalorder %v1783_v6, 0 }
 0x122   : >>> { %v541_v26 = vsel %vm538_vm11, %v540_v22, %v536_v25  ;;  %vm833_vm11 = vcmp.eq.s32.totalorder %v1783_v6, 7  ;;  %v700_v6 = vmov %v1783_v6 }
 0x123   : >>> { %v542_v27 = vmul.f32 %v541_v26, %v526_v23  ;;  %v741_v6 = vmov %v1783_v6 }
 0x124   : >>> { %v727_v6 = vmov %v1783_v6 }
 0x125   : >>> { %v544_v28 = vmul.f32 %v542_v27, %v542_v27  ;;  %vm543_vm14 = vcmp.ge.f32.partialorder %v542_v27, 0.0 }
 0x127   : >>> { %v545_v29 = vadd.f32 1.0, %v544_v28 }
 0x129   : >>> { %1625 = vrsqrt.f32 %v545_v29  ;;  %vm553_vm12 = vcmp.eq.f32.partialorder %v545_v29, inf  ;;  %v556_v36 = vand.u32 2147483648, %v545_v29  ;;  %vm555_vm13 = vcmp.eq.f32.partialorder %v545_v29, 0.0 }
 0x12f   : >>> { %v1626_v30 = vpop.eup %1625 }
 0x130   : >>> { %v547_v31 = vmul.f32 %v1626_v30, %v545_v29 }
 0x132   : >>> { %v548_v32 = vmul.f32 %v1626_v30, %v547_v31 }
 0x134   : >>> { %v549_v33 = vmul.f32 0.5, %v548_v32 }
 0x136   : >>> { %v550_v34 = vsub.f32 1.5, %v549_v33 }
 0x138   : >>> { %v551_v35 = vmul.f32 %v1626_v30, %v550_v34 }
 0x13a   : >>> { %v552_v37 = vmul.f32 %v551_v35, %v545_v29 }
 0x13c   : >>> { %v554_v38 = vsel %vm553_vm12, %v545_v29, %v552_v37  ;;  %v872_v29 = vld [vmem:[%s1875_s24] sm:$0xff]  ;;  %vm705_vm12 = vcmp.eq.s32.totalorder %v700_v6, %v697_v5  ;;  %v711_v5 = vmov %v1781_v5  ;;  %v714_v6 = vmov %v1783_v6 }
 0x13d   : >>> { %v557_v39 = vsel %vm555_vm13, %v556_v36, %v554_v38  ;;  %vm746_vm13 = vcmp.eq.s32.totalorder %v741_v6, %v738_v5 }
 0x13e   : >>> { %v558_v40 = vxor.u32 2147483648, %v557_v39 }
 0x140   : >>> { %v559_v41 = vsel %vm543_vm14, %v557_v39, %v558_v40  ;;  %vm731_vm14 = vcmp.eq.s32.totalorder %v727_v6, %v724_v5 }
 0x141   : >>> { %v560_v42 = vadd.f32 %v559_v41, %v542_v27 }
 0x143   : >>> { %1627 = vrcp.f32 %v560_v42  ;;  %v572_v48 = vand.u32 2147483648, %v560_v42  ;;  %vm566_vm15 = vweird.f32 %v560_v42  ;;  %v570_v50 = vand.u32 2147483647, %v560_v42 }
 0x145   : >>> { %v573_v54 = vor.u32 1.1754944e-38, %v572_v48  ;;  %vm571_vm3 = vcmp.eq.f32.partialorder %v570_v50, 8.507059e+37 }
 0x149   : >>> { %v1628_v45 = vpop.eup %1627 }
 0x14a   : >>> { %v562_v47 = vmul.f32 %v1628_v45, %v560_v42  ;;  %vm567_vm0 = vweird.f32 %v1628_v45 }
 0x14b   : >>> { %vm568_vm1 = vmor %vm566_vm15, %vm567_vm0  ;;  %vm718_vm15 = vcmp.eq.s32.totalorder %v714_v6, %v711_v5  ;;  %vm777_vm0 = vcmp.eq.s32.totalorder %v1781_v5, 7  ;;  %v361_v6 = vmov (%p454_p9), %v1783_v6 }
 0x14c   : >>> { %v563_v49 = vsub.f32 1.0, %v562_v47 }
 0x14e   : >>> { %v564_v53 = vmul.f32 %v1628_v45, %v563_v49 }
 0x150   : >>> { %v565_v55 = vadd.f32 %v1628_v45, %v564_v53 }
 0x152   : >>> { %v569_v56 = vsel %vm568_vm1, %v1628_v45, %v565_v55  ;;  %vm760_vm1 = vcmp.eq.s32.totalorder %v1781_v5, 0 }
 0x153   : >>> { %v574_v57 = vsel %vm571_vm3, %v573_v54, %v569_v56  ;;  %vm764_vm3 = vcmp.eq.s32.totalorder %v1781_v5, 1  ;;  %v358_v5 = vmov (%p454_p9), %v1781_v5 }
 0x154   : >>> { %v581_v58 = vsel %vm580_vm4, 0.0, %v574_v57  ;;  %vm373_vm4 = vcmp.eq.s32.totalorder (%p454_p9), %v361_v6, %v358_v5  ;;  %v377_v5 = vmov (%p454_p9), %v1781_v5  ;;  %v380_v6 = vmov (%p454_p9), %v1783_v6 }
 0x155   : >>> { %v582_v59 = vmul.f32 %v581_v58, %v581_v58  ;;  %v595_v60 = vmul.f32 %v581_v58, %v1846_v12  ;;  %v394_v5 = vmov (%p454_p9), %v1781_v5  ;;  %v397_v6 = vmov (%p454_p9), %v1783_v6 }
 0x156   : >> { %v411_v5 = vmov (%p454_p9), %v1781_v5  ;;  %v414_v6 = vmov (%p454_p9), %v1783_v6 }
 0x157   : >>> { %v583_v61 = vadd.f32 1.0, %v582_v59  ;;  %v596_v62 = vsub.f32 %v521_v19, %v595_v60  ;;  %v598_v63 = vadd.f32 %v595_v60, %v525_v20  ;;  %v869_v19 = vld [vmem:[%s1862_s30] sm:$0xff] }
 0x158   : >>> { %v870_v20 = vld [vmem:[%s1865_s15] sm:$0xff] }
 0x159   : >>> { %1629 = vrsqrt.f32 %v583_v61  ;;  %600 = vst [vmem:[%s599_s27] sm:$0xff] %v596_v62  ;;  %vm590_vm5 = vweird.f32 %v583_v61  ;;  %s637_s27 = smov [#allocation23] }
 0x15a   : >>> { %602 = vst [vmem:[%s601_s28] sm:$0xff] %v598_v63  ;;  %s1855_s28 = smov [#allocation12] }
 0x15b   : >>> { %v645_v22 = vld [vmem:[%s1855_s28] sm:$0xff] }
 0x15f   : >>> { %v1630_v0 = vpop.eup %1629 }
 0x160   : >>> { %v585_v1 = vmul.f32 %v1630_v0, %v583_v61  ;;  %vm591_vm6 = vweird.f32 %v1630_v0 }
 0x161   : >>> { %vm592_vm7 = vmor %vm590_vm5, %vm591_vm6  ;;  %vm426_vm5 = vcmp.eq.s32.totalorder (%p454_p9), %v414_v6, %v411_v5 }
 0x162   : >>> { %v586_v2 = vmul.f32 %v1630_v0, %v585_v1 }
 0x164   : >>> { %v587_v3 = vmul.f32 0.5, %v586_v2 }
 0x166   : >>> { %v588_v4 = vsub.f32 1.5, %v587_v3 }
 0x168   : >>> { %v589_v7 = vmul.f32 %v1630_v0, %v588_v4 }
 0x16a   : >>> { %v593_v8 = vsel %vm592_vm7, %v1630_v0, %v589_v7 }
 0x16b   : >>> { %604 = vst [vmem:[%s603_s11] sm:$0xff] %v593_v8  ;;  %v594_v9 = vmul.f32 %v593_v8, %v581_v58  ;;  %s1857_s11 = smov [#allocation13] }
 0x16c   : >>> { %v646_v16 = vld [vmem:[%s1857_s11] sm:$0xff] }
 0x16d   : >>> { %606 = vst [vmem:[%s605_s21] sm:$0xff] %v594_v9  ;;  %s1859_s21 = smov [#allocation14] }
 0x16e   : >>> { %v647_v17 = vld [vmem:[%s1859_s21] sm:$0xff] }
 0x172   : >>> { %v608_v10 = vld [vmem:[%s607_s22] ss:$0 sm:$0xff]  ;;  %s861_s22 = smov [#allocation23] }
 0x173   : >>> { %v617_v11 = vsel %vm616_vm8, %v608_v10, 0.0 }
 0x174   : >>> { %618 = vadd.xlane.f32.xlu0 %v617_v11  ;;  %v623_v12 = vld [vmem:[%s622_s29] ss:$0 sm:$0xff]  ;;  %s1867_s29 = smov [#allocation15] }
 0x175   : >>> { %v632_v13 = vsel %vm631_vm9, %v623_v12, 0.0  ;;  %v648_v23 = vld [vmem:[%s1867_s29] sm:$0xff] }
 0x17c   : >>> { %633 = vadd.xlane.f32.xlu0 %v632_v13 }
 0x1e7   : >>> { %v619_v14 = vpop.xlane.xlu0 %618 }
 0x1e8   : >>> { %621 = vst [vmem:[%s620_s14] sm:$0xff] %v619_v14  ;;  %s639_s14 = smov [#allocation24] }
 0x1ef   : >>> { %v634_v15 = vpop.xlane.xlu0 %633  ;;  %v638_v18 = vld [vmem:[%s637_s27] sm:$0xff]  ;;  %s665_s27 = smov [#allocation21] }
 0x1f0   : >>> { %636 = vst [vmem:[%s635_s20] sm:$0xff] %v634_v15  ;;  %s863_s20 = smov [#allocation24]  ;;  %v862_v21 = vld [vmem:[%s861_s22] sm:$0xff]  ;;  %v652_v25 = vmul.f32 %v646_v16, %v638_v18  ;;  %v656_v26 = vmul.f32 %v647_v17, %v638_v18  ;;  %v649_v46 = vmul.f32 %v645_v22, %v638_v18  ;;  %v659_v48 = vmul.f32 %v648_v23, %v638_v18  ;;  %s667_s22 = smov [#allocation22] }
 0x1f1   : >>> { %v873_v30 = vmul.f32 %v869_v19, %v862_v21  ;;  %v876_v31 = vmul.f32 %v870_v20, %v862_v21  ;;  %v880_v38 = vmul.f32 %v871_v24, %v862_v21  ;;  %v883_v42 = vmul.f32 %v872_v29, %v862_v21  ;;  %v666_v52 = vld [vmem:[%s665_s27] ss:$0 sm:$0xff]  ;;  %s693_s27 = smov [#allocation12] }
 0x1f2   : >>> { %v668_v53 = vld [vmem:[%s667_s22] ss:$0 sm:$0xff]  ;;  %s734_s22 = smov [#allocation15] }
 0x1f7   : >>> { %v640_v27 = vld [vmem:[%s639_s14] sm:$0xff]  ;;  %s1889_s14 = smov [#allocation14] }
 0x1f8   : >>> { %v864_v28 = vld [vmem:[%s863_s20] sm:$0xff]  ;;  %v653_v32 = vmul.f32 %v648_v23, %v640_v27  ;;  %v655_v33 = vmul.f32 %v645_v22, %v640_v27  ;;  %v650_v39 = vmul.f32 %v647_v17, %v640_v27  ;;  %v658_v43 = vmul.f32 %v646_v16, %v640_v27  ;;  %s735_s20 = smov [#allocation20] }
 0x1f9   : >>> { %v874_v34 = vmul.f32 %v871_v24, %v864_v28  ;;  %v877_v35 = vmul.f32 %v872_v29, %v864_v28  ;;  %v879_v36 = vmul.f32 %v869_v19, %v864_v28  ;;  %v882_v37 = vmul.f32 %v870_v20, %v864_v28  ;;  %v742_v23 = vld [vmem:[%s735_s20] ss:$0 sm:$0xff]  ;;  %s1672_s20 = smov 1  }
 0x1fa   : >>> { %v654_v40 = vsub.f32 %v652_v25, %v653_v32  ;;  %v657_v41 = vadd.f32 %v656_v26, %v655_v33  ;;  %v651_v50 = vsub.f32 %v649_v46, %v650_v39  ;;  %v660_v51 = vadd.f32 %v659_v48, %v658_v43 }
 0x1fb   : >>> { %v875_v44 = vsub.f32 %v873_v30, %v874_v34  ;;  %v878_v45 = vsub.f32 %v876_v31, %v877_v35  ;;  %v881_v47 = vadd.f32 %v880_v38, %v879_v36  ;;  %v884_v49 = vadd.f32 %v883_v42, %v882_v37 }
 0x1fc   : >>> { %662 = vst [vmem:[%s1857_s11] sm:$0xff] %v654_v40  ;;  %s1891_s11 = smov [#allocation13] }
 0x1fd   : >>> { %663 = vst [vmem:[%s1859_s21] sm:$0xff] %v657_v41  ;;  %s1903_s21 = smov [#allocation12] }
 0x1fe   : >>> { %885 = vst [vmem:[%s1862_s30] sm:$0xff] %v875_v44  ;;  %s889_s30 = smov %s1788_s30 }
 0x1ff   : >>> { %886 = vst [vmem:[%s1865_s15] sm:$0xff] %v878_v45  ;;  %s1897_s15 = smov %s1793_s15 }
 0x200   : >>> { %887 = vst [vmem:[%s1870_s23] sm:$0xff] %v881_v47  ;;  %s890_s23 = smov %s1801_s23 }
 0x201   : >>> { %888 = vst [vmem:[%s1875_s24] sm:$0xff] %v884_v49  ;;  %s1907_s24 = smov %s1805_s24 }
 0x202   : >>> { %661 = vst [vmem:[%s1855_s28] sm:$0xff] %v651_v50  ;;  %s672_s28 = smov [#allocation15] }
 0x203   : >>> { %664 = vst [vmem:[%s1867_s29] sm:$0xff] %v660_v51  ;;  %v674_v55 = vld [vmem:[%s1891_s11] sm:$0xff]  ;;  %s694_s29 = smov [#allocation19] }
 0x204   : >>> { %v675_v54 = vld [vmem:[%s1889_s14] sm:$0xff]  ;;  %v678_v4 = vmul.f32 %v674_v55, %v668_v53  ;;  %v681_v12 = vmul.f32 %v674_v55, %v666_v52 }
 0x205   : >>> { %v891_v56 = vld [vmem:[%s889_s30] ss:$0 sm:$0xff]  ;;  %v1551_v58 = vld [vmem:[%s889_s30 + $0x7] ss:$0 sm:$0xff]  ;;  %v686_v9 = vmul.f32 %v675_v54, %v668_v53  ;;  %v683_v10 = vmul.f32 %v675_v54, %v666_v52 }
 0x206   : >>> { %v1550_v57 = vld [vmem:[%s889_s30 - $0x1] sm:$0xfe]  ;;  %v1555_v62 = vld [vmem:[%s1897_s15 + $0x7] ss:$0 sm:$0xff] }
 0x207   : >>> { %v898_v59 = vsel %vm821_vm10, %v891_v56, %v1550_v57  ;;  %v915_v60 = vld [vmem:[%s1897_s15] ss:$0 sm:$0xff]  ;;  %v1553_v0 = vld [vmem:[%s890_s23 + $0x1] sm:$0x7f] }
 0x208   : >>> { %v1554_v61 = vld [vmem:[%s1897_s15 - $0x1] sm:$0xfe]  ;;  %901 = vst [vmem:[%s889_s30] sm:$0xff] %v898_v59  ;;  %v910_v2 = vsel %vm833_vm11, %v1551_v58, %v1553_v0 }
 0x209   : >>> { %v902_v63 = vld [vmem:[%s890_s23] ss:$0 sm:$0xff]  ;;  %v922_v1 = vsel %vm821_vm10, %v915_v60, %v1554_v61  ;;  %v1557_v3 = vld [vmem:[%s1907_s24 + $0x1] sm:$0x7f] }
 0x20a   : >>> { %1552 = vst [vmem:[%s889_s30 + $0x1] sm:$0x1] %v902_v63  ;;  %v926_v7 = vld [vmem:[%s1907_s24] ss:$0 sm:$0xff]  ;;  %v934_v8 = vsel %vm833_vm11, %v1555_v62, %v1557_v3 }
 0x20b   : >>> { %912 = vst [vmem:[%s890_s23] sm:$0xff] %v910_v2  ;;  %v673_v11 = vld [vmem:[%s1903_s21] sm:$0xff] }
 0x20c   : >>> { %925 = vst [vmem:[%s1897_s15] sm:$0xff] %v922_v1  ;;  %v676_v13 = vld [vmem:[%s672_s28] sm:$0xff]  ;;  %v677_v14 = vmul.f32 %v673_v11, %v666_v52  ;;  %v680_v15 = vmul.f32 %v673_v11, %v668_v53 }
 0x20d   : >>> { %1556 = vst [vmem:[%s1897_s15 + $0x1] sm:$0x1] %v926_v7  ;;  %v684_v16 = vmul.f32 %v676_v13, %v668_v53  ;;  %v687_v17 = vmul.f32 %v676_v13, %v666_v52  ;;  %v701_v22 = vld [vmem:[%s694_s29] ss:$0 sm:$0xff]  ;;  %s1941_s29 = smov [#allocation14] }
 0x20e   : >>> { %936 = vst [vmem:[%s1907_s24] sm:$0xff] %v934_v8  ;;  %v679_v18 = vsub.f32 %v677_v14, %v678_v4  ;;  %v682_v21 = vadd.f32 %v681_v12, %v680_v15 }
 0x20f   : >>> { %v688_v19 = vadd.f32 %v687_v17, %v686_v9  ;;  %v685_v20 = vsub.f32 %v683_v10, %v684_v16 }
 0x210   : >>> { %689 = vst [vmem:[%s1903_s21] sm:$0xff] %v679_v18  ;;  %s708_s21 = smov [#allocation13] }
 0x211   : >>> { %692 = vst [vmem:[%s672_s28] sm:$0xff] %v688_v19  ;;  %s1939_s28 = smov [#allocation15] }
 0x212   : >>> { %691 = vst [vmem:[%s1889_s14] sm:$0xff] %v685_v20  ;;  %s721_s14 = smov [#allocation14] }
 0x213   : >>> { %690 = vst [vmem:[%s1891_s11] sm:$0xff] %v682_v21  ;;  %s1937_s11 = smov [#allocation12] }
 0x217   : >>> { %v702_v24 = vld [vmem:[%s693_s27] sm:$0xff] }
 0x218   : >>> { %v743_v25 = vld [vmem:[%s734_s22] sm:$0xff]  ;;  %v706_v26 = vsel %vm705_vm12, %v701_v22, %v702_v24 }
 0x219   : >>> { %v747_v27 = vsel %vm746_vm13, %v742_v23, %v743_v25  ;;  %v728_v28 = vld [vmem:[%s721_s14] sm:$0xff]  ;;  %707 = vst [vmem:[%s693_s27] sm:$0xff] %v706_v26  ;;  %s750_s27 = smov [#allocation13] }
 0x21a   : >>> { %748 = vst [vmem:[%s734_s22] sm:$0xff] %v747_v27  ;;  %v732_v29 = vsel %vm731_vm14, 0.0, %v728_v28  ;;  %v715_v30 = vld [vmem:[%s708_s21] sm:$0xff]  ;;  %s1673_s22 = smov 127  }
 0x21b   : >>> { %733 = vst [vmem:[%s721_s14] sm:$0xff] %v732_v29  ;;  %v719_v31 = vsel %vm718_vm15, 0.0, %v715_v30  ;;  %s1949_s14 = smov [#allocation13] }
 0x21c   : >>> { %720 = vst [vmem:[%s708_s21] sm:$0xff] %v719_v31  ;;  %s814_s21 = smov [#allocation14] }
 0x220   : >>> { %v755_v32 = vld [vmem:[%s1937_s11] sm:$0xff] }
 0x221   : >>> { %v783_v33 = vld [vmem:[%s1939_s28] sm:$0xff]  ;;  %756 = vrot.lane.b32.xlu1 %v755_v32, %s1672_s20 }
 0x222   : >>> { %784 = vrot.lane.b32.xlu0 %v783_v33, %s1672_s20  ;;  %v787_v34 = vld [vmem:[%s1941_s29] sm:$0xff] }
 0x223   : >>> { %788 = vrot.lane.b32.xlu2 %v787_v34, %s1672_s20  ;;  %v772_v35 = vld [vmem:[%s750_s27] sm:$0xff] }
 0x229   : >>> { %752 = vrot.lane.b32.xlu1 %v772_v35, %s1672_s20  ;;  %s813_s20 = smov [#allocation12] }
 0x22b   : >>> { %773 = vrot.lane.b32.xlu2 %v772_v35, %s1673_s22 }
 0x231   : >>> { %805 = vrot.lane.b32.xlu1 %v783_v33, %s1673_s22  ;;  %s398_s22 = smov (%p454_p9), [#allocation14] }
 0x27d   : >>> { %v789_v36 = vpop.permute.xlu2 %788 }
 0x27e   : >>> { %v793_v44 = vsel %vm760_vm1, %v787_v34, %v789_v36 }
 0x285   : >>> { %v774_v37 = vpop.permute.xlu2 %773 }
 0x286   : >>> { %v778_v38 = vsel %vm777_vm0, %v755_v32, %v774_v37 }
 0x287   : >>> { %780 = vst [vmem:[%s750_s27] sm:$0xff] %v778_v38  ;;  %s381_s27 = smov (%p454_p9), [#allocation13] }
 0x28e   : >>> { %v839_v39 = vld [vmem:[%s1949_s14] ss:$0 sm:$0xff]  ;;  %v1547_v41 = vld [vmem:[%s1949_s14 + $0x7] ss:$0 sm:$0xff] }
 0x28f   : >>> { %v1546_v40 = vld [vmem:[%s1949_s14 - $0x1] sm:$0xfe] }
 0x290   : >>> { %v846_v42 = vsel %vm821_vm10, %v839_v39, %v1546_v40 }
 0x291   : >>> { %849 = vst [vmem:[%s1949_s14] sm:$0xff] %v846_v42 }
 0x293   : >>> { %v757_v43 = vpop.permute.xlu1 %756 }
 0x294   : >>> { %v785_v45 = vpop.permute.xlu0 %784  ;;  %v761_v48 = vsel %vm760_vm1, %v755_v32, %v757_v43 }
 0x295   : >>> { %v797_v46 = vsel %vm764_vm3, %v785_v45, %v793_v44 }
 0x296   : >>> { %v803_v47 = vsel %vm1411_vm2, %v797_v46, 0.0 }
 0x297   : >>> { %811 = vst [vmem:[%s1941_s29] sm:$0xff] %v803_v47  ;;  %s362_s29 = smov (%p454_p9), [#allocation12] }
 0x29b   : >>> { %v753_v49 = vpop.permute.xlu1 %752 }
 0x29c   : >>> { %v765_v50 = vsel %vm764_vm3, %v753_v49, %v761_v48 }
 0x29d   : >>> { %v771_v51 = vsel %vm1411_vm2, %v765_v50, 0.0 }
 0x29e   : >>> { %779 = vst [vmem:[%s1937_s11] sm:$0xff] %v771_v51  ;;  %v1545_v53 = vld [vmem:[%s814_s21 + $0x1] sm:$0x7f]  ;;  %v826_v60 = vld [vmem:[%s814_s21] ss:$0 sm:$0xff]  ;;  %s838_s11 = smov [#allocation15] }
 0x2a3   : >>> { %v806_v52 = vpop.permute.xlu1 %805 }
 0x2a4   : >>> { %v810_v54 = vsel %vm777_vm0, %v787_v34, %v806_v52 }
 0x2a5   : >>> { %v815_v55 = vld [vmem:[%s813_s20] ss:$0 sm:$0xff]  ;;  %v1543_v57 = vld [vmem:[%s813_s20 + $0x7] ss:$0 sm:$0xff]  ;;  %812 = vst [vmem:[%s1939_s28] sm:$0xff] %v810_v54  ;;  %s937_s28 = sadd.s32 (%p454_p9), 1, %s1665_s16  }
 0x2a6   : >>> { %v1542_v56 = vld [vmem:[%s813_s20 - $0x1] sm:$0xfe]  ;;  %v834_v59 = vsel %vm833_vm11, %v1543_v57, %v1545_v53  ;;  %p450_p10 = scmp.ge.s32.totalorder (%p454_p9), %s937_s28, 15  ;;  %s2066_s16 = smov (%p454_p9), %s937_s28 }
 0x2a7   : >>> { %v822_v58 = vsel %vm821_vm10, %v815_v55, %v1542_v56  ;;  %836 = vst [vmem:[%s814_s21] sm:$0xff] %v834_v59 }
 0x2a8   : >>> { %825 = vst [vmem:[%s813_s20] sm:$0xff] %v822_v58 }
 0x2a9   : >>> { %1544 = vst [vmem:[%s813_s20 + $0x1] sm:$0x1] %v826_v60 }
 0x2ac   : >>> { %v850_v61 = vld [vmem:[%s838_s11] ss:$0 sm:$0xff]  ;;  %v1549_v62 = vld [vmem:[%s838_s11 + $0x1] sm:$0x7f] }
 0x2ad   : >>> { %1548 = vst [vmem:[%s1949_s14 + $0x1] sm:$0x1] %v850_v61  ;;  %v858_v63 = vsel %vm833_vm11, %v1547_v41, %v1549_v62  ;;  %456 = sbr.rel (!%p454_p9) target bundleno = 248 (0xf8), region = 494  ;;  %s415_s14 = smov (%p454_p9), [#allocation15] }
 0x2ae   : >>> { %860 = vst [vmem:[%s838_s11] sm:$0xff] %v858_v63  ;;  %v404_v4 = vld [vmem:[%s398_s22] sm:$0xff] (%p454_p9) }
 0x2af   : >> { %v405_v10 = vsel (%p454_p9), %vm1411_vm2, %v404_v4, 0.0 }
 0x2b0   : >> { %v368_v0 = vld [vmem:[%s362_s29] sm:$0xff] (%p454_p9)  ;;  %v406_v12 = vmul.f32 (%p454_p9), %v405_v10, %v405_v10 }
 0x2b1   : >> { %v369_v2 = vsel (%p454_p9), %vm1411_vm2, %v368_v0, 0.0 }
 0x2b2   : >> { %v370_v8 = vmul.f32 %v369_v2, %v369_v2 }
 0x2b4   : >> { %v387_v1 = vld [vmem:[%s381_s27] sm:$0xff]  ;;  %v374_v15 = vsel %vm373_vm4, 0.0, %v370_v8 }
 0x2b5   : >> { %v388_v3 = vsel %vm1411_vm2, %v387_v1, 0.0  ;;  %v421_v7 = vld [vmem:[%s415_s14] sm:$0xff] }
 0x2b6   : >> { %v389_v9 = vmul.f32 %v388_v3, %v388_v3  ;;  %v422_v11 = vsel %vm1411_vm2, %v421_v7, 0.0 }
 0x2b7   : >> { %v423_v14 = vmul.f32 %v422_v11, %v422_v11 }
 0x2b8   : >> { %v391_v13 = vadd.f32 %v389_v9, %v370_v8  ;;  %v390_v17 = vadd.f32 %v389_v9, %v374_v15 }
 0x2b9   : >> { %v427_v20 = vsel %vm426_vm5, 0.0, %v423_v14 }
 0x2ba   : >> { %v408_v16 = vadd.f32 %v406_v12, %v391_v13  ;;  %v407_v19 = vadd.f32 %v406_v12, %v390_v17 }
 0x2bc   : >> { %v429_v18 = vadd.f32 %v423_v14, %v408_v16  ;;  %v428_v21 = vadd.f32 %v427_v20, %v407_v19 }
 0x2be   : >> { %430 = vadd.xlane.f32.xlu0 %v429_v18 }
 0x2c6   : >> { %438 = vadd.xlane.f32.xlu0 %v428_v21 }
 0x331   : >> { %v431_v22 = vpop.xlane.xlu0 %430 }
 0x332   : >> { %v432_v23 = vrot.slane %v431_v22, 4 }
 0x334   : >> { %v433_v24 = vadd.f32 %v432_v23, %v431_v22 }
 0x336   : >> { %v434_v25 = vrot.slane %v433_v24, 2 }
 0x338   : >> { %v435_v29 = vadd.f32 %v434_v25, %v433_v24 }
 0x339   : >> { %v439_v26 = vpop.xlane.xlu0 %438 }
 0x33a   : >> { %v440_v27 = vrot.slane %v439_v26, 4  ;;  %v436_v32 = vrot.slane %v435_v29, 1 }
 0x33c   : >> { %v441_v28 = vadd.f32 %v440_v27, %v439_v26  ;;  %v437_v35 = vadd.f32 %v436_v32, %v435_v29 }
 0x33e   : >> { %v442_v30 = vrot.slane %v441_v28, 2 }
 0x340   : >> { %v443_v31 = vadd.f32 %v442_v30, %v441_v28 }
 0x342   : >> { %v444_v33 = vrot.slane %v443_v31, 1 }
 0x344   : >> { %v445_v34 = vadd.f32 %v444_v33, %v443_v31 }
 0x346   : >> { %1576 = vpush %v445_v34 }
 0x347   : >> { %1578 = vpush %v437_v35 }
 0x377   : >> { %s1577_s17 = spop %1576 }
 0x378   : >> { %s1579_s21 = spop %1578 }
 0x379   : >> { %s448_s20 = smul.f32 1e-10, %s1579_s21 }
 0x37b   : >> { %p449_p11 = scmp.le.f32.partialorder %s1577_s17, %s448_s20 }
 0x37d   : >> { %p451_p12 = por %p450_p10, %p449_p11 }
 0x37f   : > { %939 = sbr.rel (!%p451_p12) target bundleno = 247 (0xf7), region = 505 }
 0x384 PF: > { %s944_s11 = smov [#allocation12]  ;;  %v948_v5 = vmov %v1781_v5  ;;  %v951_v6 = vmov %v1783_v6  ;;  %s964_s29 = smov [#allocation15] }
 0x385   : > { %v968_v5 = vmov %v1781_v5  ;;  %v971_v6 = vmov %v1783_v6  ;;  %v952_v36 = vld [vmem:[%s944_s11] sm:$0xff]  ;;  %vm955_vm6 = vcmp.eq.s32.totalorder %v951_v6, %v948_v5  ;;  %s940_s16 = sand.u32 7, %s1740_s12   ;;  %s1023_s22 = sshrl.u32 (%p1754_p3), %s1740_s12, 3 }
 0x386   : > { %vm975_vm7 = vcmp.eq.s32.totalorder %v971_v6, %v968_v5  ;;  %v956_v37 = vsel %vm955_vm6, %v952_v36, 0.0  ;;  %v972_v39 = vld [vmem:[%s964_s29] sm:$0xff]  ;;  %s941_s28 = scalar_lea.vmem [#allocation4], %s940_s16  ;;  %s943_s27 = scalar_lea.vmem [#allocation6], %s940_s16 }
 0x387   : > { %v957_v38 = vrot.slane %v956_v37, 4  ;;  %v976_v40 = vsel %vm975_vm7, %v972_v39, 0.0  ;;  %s945_s28 = smov %s941_s28  ;;  %s965_s27 = smov %s943_s27 }
 0x388   : > { %v977_v42 = vrot.slane %v976_v40, 4  ;;  %s1564_s14 = sshll.u32 (%p1754_p3), %s1023_s22, 1 }
 0x389   : > { %v958_v41 = vadd.f32 %v957_v38, %v956_v37  ;;  %s1025_s20 = scalar_lea.vmem (%p1754_p3), %s2058_s4, %s1564_s14 }
 0x38a   : > { %v978_v44 = vadd.f32 %v977_v42, %v976_v40 }
 0x38b   : > { %v959_v43 = vrot.slane %v958_v41, 2 }
 0x38c   : > { %v979_v46 = vrot.slane %v978_v44, 2 }
 0x38d   : > { %v960_v45 = vadd.f32 %v959_v43, %v958_v41 }
 0x38e   : > { %v980_v48 = vadd.f32 %v979_v46, %v978_v44 }
 0x38f   : > { %v961_v47 = vrot.slane %v960_v45, 1 }
 0x390   : > { %v981_v5 = vrot.slane %v980_v48, 1 }
 0x391   : > { %v962_v49 = vadd.f32 %v961_v47, %v960_v45 }
 0x392   : > { %v982_v6 = vadd.f32 %v981_v5, %v980_v48 }
 0x393   : > { %963 = vst [vmem:[%s945_s28] sm:$0x1] %v962_v49 }
 0x394   : > { %983 = vst [vmem:[%s965_s27] sm:$0x1] %v982_v6 }
 0x398   : > { %1022 = sbr.rel (!%p1754_p3) target bundleno = 932 (0x3a4), region = 174 }
 0x39a   : > { %v986_v50 = vld [vmem:[#allocation4] sm:$0x3] }
 0x39b   : > { %989 = vst [vmem:[%s287_s25] sm:$0x3] %v986_v50  ;;  %v992_v51 = vld [vmem:[#allocation6] sm:$0x3] }
 0x39c   : > { %995 = vst [vmem:[%s293_s26] sm:$0x3] %v992_v51 }
 0x3a2   : > { %v1042_v52 = vld [vmem:[%s287_s25] sm:$0x3] }
 0x3a3   : > { %1043 = vst [vmem:[%s1025_s20] sm:$0x3] %v1042_v52 }
 0x3a4 PF: > { %1061 = sbr.rel (!%p1754_p3) target bundleno = 940 (0x3ac), region = 208  ;;  %s1062_s11 = sshrl.u32 (%p1754_p3), %s1740_s12, 3 }
 0x3a5   : > { %s1565_s29 = sshll.u32 (%p1754_p3), %s1062_s11, 1 }
 0x3a6   : > { %s1064_s25 = scalar_lea.vmem (%p1754_p3), %s2059_s5, %s1565_s29 }
 0x3aa   : > { %v1081_v53 = vld [vmem:[%s293_s26] sm:$0x3] }
 0x3ab   : > { %1082 = vst [vmem:[%s1064_s25] sm:$0x3] %v1081_v53 }
 0x3ac PF: > { %s1566_s27 = sshll.u32 %s1740_s12, 3  ;;  %v1128_v54 = vld [vmem:[%s1788_s30] sm:$0xff]  ;;  %v1163_v55 = vld [vmem:[%s1793_s15] sm:$0xff] }
 0x3ad   : > { %s1099_s18 = scalar_lea.vmem %s2060_s6, %s1566_s27  ;;  %s1134_s17 = scalar_lea.vmem %s2061_s7, %s1566_s27  ;;  %v1198_v56 = vld [vmem:[%s1801_s23] sm:$0xff]  ;;  %v1233_v57 = vld [vmem:[%s1805_s24] sm:$0xff] }
 0x3ae   : > { %1129 = vst [vmem:[%s1099_s18] sm:$0xff] %v1128_v54  ;;  %s1169_s11 = scalar_lea.vmem %s2062_s8, %s1566_s27  ;;  %s1204_s12 = scalar_lea.vmem %s2063_s9, %s1566_s27 }
 0x3af   : > { %1164 = vst [vmem:[%s1134_s17] sm:$0xff] %v1163_v55 }
 0x3b0   : > { %1199 = vst [vmem:[%s1169_s11] sm:$0xff] %v1198_v56 }
 0x3b1   : > { %1234 = vst [vmem:[%s1204_s12] sm:$0xff] %v1233_v57 }
 0x3b2 PF: > { %s2067_s15 = sld [smem:[#allocation25_spill]]  ;;  %p13_p13 = scmp.ge.s32.totalorder %s1743_s13, 4  }
 0x3b3   : > { %s2068_s30 = smov %s1657_s10  ;;  %s2070_s11 = smov %s1743_s13 }
 0x3b4   :  { %15 = sbr.rel (!%p13_p13) target bundleno = 2 (0x2), region = 516 }
 0x3b8   : > { %s2069_s10 = smov %s2067_s15 }

// kernel: gsr_layer_pallas.1
= control target key start
LH: loop header
LB: loop body
LE: loop exit
PB: predicated region body
PF: predicated region fallthrough
CT: control target
= control target key end

     0   :  { %s829_s18 = smov 0   ;;  %s1269_s0 = inlined_call_operand.vmem [shape: f32[128,128], index: 0, kind: input, shape index: {}]   ;;  %s1270_s1 = inlined_call_operand.vmem [shape: f32[128,128], index: 1, kind: input, shape index: {}]   ;;  %s1271_s2 = inlined_call_operand.vmem [shape: f32[2,128,128], index: 2, kind: input, shape index: {}]   ;;  %s1272_s3 = inlined_call_operand.vmem [shape: f32[2,128,128], index: 3, kind: input, shape index: {}]   ;;  %s1273_s4 = inlined_call_operand.vmem [shape: f32[2,128,128], index: 4, kind: output, shape index: {0}]   ;;  %s1274_s5 = inlined_call_operand.vmem [shape: f32[2,128,128], index: 5, kind: output, shape index: {1}]  }
   0x1 LB: > { %s748_s19 = sadd.s32 4294967295, %s797_s18   ;;  %p752_p0 = scmp.ge.s32.totalorder %s797_s18, 1  ;;  %s797_s18 = sphi %s829_s18, %s16_s18  }
   0x2   : > { %p200_p1 = scmp.lt.s32.totalorder %s797_s18, 3 }
   0x4   : > { %p201_p2 = pnand %p752_p0, %p200_p1 }
   0x5   : > { %p238_p3 = scmp.lt.s32.totalorder (!%p201_p2), %s748_s19, 1 }
   0x6   : > { %204 = sbr.rel (%p201_p2) target bundleno = 690 (0x2b2), region = 36 }
   0xb   : > { %s1276_s19 = smov (!%p238_p3, %s748_s19), 1  ;;  %v258_v14 = vld [vmem:[%s1269_s0] sm:$0xff]  ;;  %v259_v19 = vld [vmem:[%s1269_s0 + $0x8] sm:$0xff]  ;;  %v260_v22 = vld [vmem:[%s1269_s0 + $0x10] sm:$0xff] }
   0xc   : > { %s837_s20 = sshll.u32 %s1276_s19, 7  ;;  %v274_v15 = vld [vmem:[%s1270_s1] sm:$0xff]  ;;  %v275_v20 = vld [vmem:[%s1270_s1 + $0x8] sm:$0xff]  ;;  %v276_v23 = vld [vmem:[%s1270_s1 + $0x10] sm:$0xff] }
   0xd   : > { %s843_s23 = scalar_lea.vmem %s1271_s2, %s837_s20  ;;  %v290_v18 = vadd.f32 %v274_v15, %v258_v14  ;;  %v291_v21 = vadd.f32 %v275_v20, %v259_v19  ;;  %v292_v24 = vadd.f32 %v276_v23, %v260_v22  ;;  %v261_v25 = vld [vmem:[%s1269_s0 + $0x18] sm:$0xff]  ;;  %v262_v28 = vld [vmem:[%s1269_s0 + $0x20] sm:$0xff]  ;;  %v263_v31 = vld [vmem:[%s1269_s0 + $0x28] sm:$0xff]  ;;  %s913_s10 = scalar_lea.vmem %s1272_s3, %s837_s20 }
   0xe   : > { %v321_v0 = vld [vmem:[%s843_s23 + $0x78] sm:$0xff]  ;;  %v320_v1 = vld [vmem:[%s843_s23 + $0x70] sm:$0xff]  ;;  %v319_v2 = vld [vmem:[%s843_s23 + $0x68] sm:$0xff]  ;;  %s989_s24 = scalar_lea.vmem %s1273_s4, %s837_s20  ;;  %s1200_s27 = scalar_lea.vmem %s1274_s5, %s837_s20 }
   0xf   : > { %322 = vmatpush.msra.mxu0 %v321_v0  ;;  %v318_v3 = vld [vmem:[%s843_s23 + $0x60] sm:$0xff]  ;;  %v317_v4 = vld [vmem:[%s843_s23 + $0x58] sm:$0xff]  ;;  %v316_v5 = vld [vmem:[%s843_s23 + $0x50] sm:$0xff] }
  0x10   : > { %v315_v6 = vld [vmem:[%s843_s23 + $0x48] sm:$0xff]  ;;  %v314_v7 = vld [vmem:[%s843_s23 + $0x40] sm:$0xff]  ;;  %v313_v8 = vld [vmem:[%s843_s23 + $0x38] sm:$0xff] }
  0x11   : > { %323 = vmatpush.msra.mxu0 %v320_v1  ;;  %v312_v9 = vld [vmem:[%s843_s23 + $0x30] sm:$0xff]  ;;  %v311_v10 = vld [vmem:[%s843_s23 + $0x28] sm:$0xff]  ;;  %v310_v11 = vld [vmem:[%s843_s23 + $0x20] sm:$0xff] }
  0x12   : > { %v309_v12 = vld [vmem:[%s843_s23 + $0x18] sm:$0xff]  ;;  %v308_v13 = vld [vmem:[%s843_s23 + $0x10] sm:$0xff]  ;;  %v307_v16 = vld [vmem:[%s843_s23 + $0x8] sm:$0xff] }
  0x13   : > { %324 = vmatpush.msra.mxu0 %v319_v2  ;;  %v306_v17 = vld [vmem:[%s843_s23] sm:$0xff]  ;;  %v277_v26 = vld [vmem:[%s1270_s1 + $0x18] sm:$0xff]  ;;  %v279_v32 = vld [vmem:[%s1270_s1 + $0x28] sm:$0xff] }
  0x14   : > { %v293_v27 = vadd.f32 %v277_v26, %v261_v25  ;;  %v278_v29 = vld [vmem:[%s1270_s1 + $0x20] sm:$0xff]  ;;  %v295_v33 = vadd.f32 %v279_v32, %v263_v31  ;;  %v264_v34 = vld [vmem:[%s1269_s0 + $0x30] sm:$0xff]  ;;  %v265_v37 = vld [vmem:[%s1269_s0 + $0x38] sm:$0xff]  ;;  %v484_v31 = vlaneseq }
  0x15   : > { %325 = vmatpush.msra.mxu0 %v318_v3  ;;  %v294_v30 = vadd.f32 %v278_v29, %v262_v28  ;;  %v280_v35 = vld [vmem:[%s1270_s1 + $0x30] sm:$0xff]  ;;  %v281_v38 = vld [vmem:[%s1270_s1 + $0x38] sm:$0xff]  ;;  %v266_v41 = vld [vmem:[%s1269_s0 + $0x40] sm:$0xff] }
  0x16   : > { %v296_v36 = vadd.f32 %v280_v35, %v264_v34  ;;  %v297_v39 = vadd.f32 %v281_v38, %v265_v37  ;;  %v402_v40 = vld [vmem:[%s913_s10 + $0x78] sm:$0xff]  ;;  %v282_v42 = vld [vmem:[%s1270_s1 + $0x40] sm:$0xff]  ;;  %v401_v44 = vld [vmem:[%s913_s10 + $0x70] sm:$0xff]  ;;  %v981_v34 = vand.u32 127, %v484_v31 }
  0x17   : > { %326 = vmatpush.msra.mxu0 %v317_v4  ;;  %403 = vmatpush.msra.mxu1 %v402_v40  ;;  %v298_v43 = vadd.f32 %v282_v42, %v266_v41  ;;  %v400_v45 = vld [vmem:[%s913_s10 + $0x68] sm:$0xff]  ;;  %v399_v48 = vld [vmem:[%s913_s10 + $0x60] sm:$0xff]  ;;  %v398_v50 = vld [vmem:[%s913_s10 + $0x58] sm:$0xff] }
  0x18   : > { %v267_v46 = vld [vmem:[%s1269_s0 + $0x48] sm:$0xff]  ;;  %v397_v51 = vld [vmem:[%s913_s10 + $0x50] sm:$0xff]  ;;  %v395_v55 = vld [vmem:[%s913_s10 + $0x40] sm:$0xff] }
  0x19   : > { %327 = vmatpush.msra.mxu0 %v316_v5  ;;  %v283_v47 = vld [vmem:[%s1270_s1 + $0x48] sm:$0xff]  ;;  %404 = vmatpush.msra.mxu1 %v401_v44  ;;  %v268_v53 = vld [vmem:[%s1269_s0 + $0x50] sm:$0xff]  ;;  %v394_v57 = vld [vmem:[%s913_s10 + $0x38] sm:$0xff] }
  0x1a   : > { %v299_v49 = vadd.f32 %v283_v47, %v267_v46  ;;  %v396_v52 = vld [vmem:[%s913_s10 + $0x48] sm:$0xff]  ;;  %v284_v54 = vld [vmem:[%s1270_s1 + $0x50] sm:$0xff]  ;;  %v269_v60 = vld [vmem:[%s1269_s0 + $0x58] sm:$0xff] }
  0x1b   : > { %328 = vmatpush.msra.mxu0 %v315_v6  ;;  %405 = vmatpush.msra.mxu1 %v400_v45  ;;  %v300_v56 = vadd.f32 %v284_v54, %v268_v53  ;;  %v393_v58 = vld [vmem:[%s913_s10 + $0x30] sm:$0xff]  ;;  %v392_v59 = vld [vmem:[%s913_s10 + $0x28] sm:$0xff]  ;;  %v285_v61 = vld [vmem:[%s1270_s1 + $0x58] sm:$0xff] }
  0x1c   : > { %v391_v62 = vld [vmem:[%s913_s10 + $0x20] sm:$0xff]  ;;  %v301_v63 = vadd.f32 %v285_v61, %v269_v60  ;;  %v390_v0 = vld [vmem:[%s913_s10 + $0x18] sm:$0xff]  ;;  %v389_v1 = vld [vmem:[%s913_s10 + $0x10] sm:$0xff] }
  0x1d   : > { %329 = vmatpush.msra.mxu0 %v314_v7  ;;  %406 = vmatpush.msra.mxu1 %v399_v48  ;;  %v388_v2 = vld [vmem:[%s913_s10 + $0x8] sm:$0xff]  ;;  %v270_v3 = vld [vmem:[%s1269_s0 + $0x60] sm:$0xff]  ;;  %v289_v14 = vld [vmem:[%s1270_s1 + $0x78] sm:$0xff] }
  0x1e   : > { %v286_v4 = vld [vmem:[%s1270_s1 + $0x60] sm:$0xff]  ;;  %v271_v7 = vld [vmem:[%s1269_s0 + $0x68] sm:$0xff] }
  0x1f   : > { %330 = vmatpush.msra.mxu0 %v313_v8  ;;  %407 = vmatpush.msra.mxu1 %v398_v50  ;;  %v302_v5 = vadd.f32 %v286_v4, %v270_v3  ;;  %v387_v6 = vld [vmem:[%s913_s10] sm:$0xff]  ;;  %v287_v8 = vld [vmem:[%s1270_s1 + $0x68] sm:$0xff] }
  0x21   : > { %331 = vmatpush.msra.mxu0 %v312_v9  ;;  %408 = vmatpush.msra.mxu1 %v397_v51  ;;  %v303_v9 = vadd.f32 %v287_v8, %v271_v7 }
  0x23   : > { %332 = vmatpush.msra.mxu0 %v311_v10  ;;  %409 = vmatpush.msra.mxu1 %v396_v52  ;;  %v272_v10 = vld [vmem:[%s1269_s0 + $0x70] sm:$0xff] }
  0x25   : > { %333 = vmatpush.msra.mxu0 %v310_v11  ;;  %410 = vmatpush.msra.mxu1 %v395_v55  ;;  %v288_v11 = vld [vmem:[%s1270_s1 + $0x70] sm:$0xff] }
  0x27   : > { %334 = vmatpush.msra.mxu0 %v309_v12  ;;  %411 = vmatpush.msra.mxu1 %v394_v57  ;;  %v304_v12 = vadd.f32 %v288_v11, %v272_v10 }
  0x29   : > { %335 = vmatpush.msra.mxu0 %v308_v13  ;;  %412 = vmatpush.msra.mxu1 %v393_v58  ;;  %v273_v13 = vld [vmem:[%s1269_s0 + $0x78] sm:$0xff] }
  0x2a   : > { %v305_v15 = vadd.f32 %v289_v14, %v273_v13 }
  0x2b   : > { %336 = vmatpush.msra.mxu0 %v307_v16  ;;  %413 = vmatpush.msra.mxu1 %v392_v59 }
  0x2d   : > { %337 = vmatpush.msra.mxu0 %v306_v17  ;;  %414 = vmatpush.msra.mxu1 %v391_v62 }
  0x2e   : > { %338 = vmatmul.f32.vlgmr.msra.gmra.mxu0 %v290_v18 }
  0x2f   : > { %415 = vmatpush.msra.mxu1 %v390_v0 }
  0x31   : > { %416 = vmatpush.msra.mxu1 %v389_v1 }
  0x33   : > { %417 = vmatpush.msra.mxu1 %v388_v2 }
  0x35   : > { %418 = vmatpush.msra.mxu1 %v387_v6 }
  0x36   : > { %341 = vmatmul.f32.gmra.mxu0 %v291_v21 }
  0x3e   : > { %344 = vmatmul.f32.gmra.mxu0 %v292_v24 }
  0x46   : > { %347 = vmatmul.f32.gmra.mxu0 %v293_v27 }
  0x4e   : > { %350 = vmatmul.f32.gmra.mxu0 %v294_v30 }
  0x56   : > { %353 = vmatmul.f32.gmra.mxu0 %v295_v33  ;;  %v979_v33 = vshrl.u32 %v484_v31, 7 }
  0x58   : > { %vm503_vm0 = vcmp.eq.s32.totalorder %v979_v33, %v981_v34  ;;  %v999_v38 = vadd.s32 8, %v979_v33  ;;  %v1011_v42 = vadd.s32 16, %v979_v33  ;;  %v1023_v46 = vadd.s32 24, %v979_v33 }
  0x59   : > { %v1035_v50 = vadd.s32 32, %v979_v33  ;;  %v1047_v54 = vadd.s32 40, %v979_v33  ;;  %v1059_v58 = vadd.s32 48, %v979_v33  ;;  %v1071_v62 = vadd.s32 56, %v979_v33 }
  0x5a   : > { %vm504_vm1 = vcmp.eq.s32.totalorder %v999_v38, %v981_v34  ;;  %vm505_vm2 = vcmp.eq.s32.totalorder %v1011_v42, %v981_v34  ;;  %vm506_vm3 = vcmp.eq.s32.totalorder %v1023_v46, %v981_v34  ;;  %v1083_v2 = vadd.s32 64, %v979_v33 }
  0x5b   : > { %vm507_vm4 = vcmp.eq.s32.totalorder %v1035_v50, %v981_v34  ;;  %vm508_vm5 = vcmp.eq.s32.totalorder %v1047_v54, %v981_v34  ;;  %vm509_vm6 = vcmp.eq.s32.totalorder %v1059_v58, %v981_v34  ;;  %vm510_vm7 = vcmp.eq.s32.totalorder %v1071_v62, %v981_v34 }
  0x5c   : > { %vm511_vm8 = vcmp.eq.s32.totalorder %v1083_v2, %v981_v34  ;;  %v1095_v6 = vadd.s32 72, %v979_v33  ;;  %v1107_v10 = vadd.s32 80, %v979_v33  ;;  %v1119_v14 = vadd.s32 88, %v979_v33 }
  0x5e   : > { %356 = vmatmul.f32.gmra.mxu0 %v296_v36  ;;  %vm512_vm9 = vcmp.eq.s32.totalorder %v1095_v6, %v981_v34  ;;  %vm513_vm10 = vcmp.eq.s32.totalorder %v1107_v10, %v981_v34  ;;  %vm514_vm11 = vcmp.eq.s32.totalorder %v1119_v14, %v981_v34 }
  0x66   : > { %359 = vmatmul.f32.gmra.mxu0 %v297_v39 }
  0x6e   : > { %362 = vmatmul.f32.gmra.mxu0 %v298_v43 }
  0x76   : > { %365 = vmatmul.f32.gmra.mxu0 %v299_v49 }
  0x7e   : > { %368 = vmatmul.f32.gmra.mxu0 %v300_v56 }
  0x86   : > { %371 = vmatmul.f32.gmra.mxu0 %v301_v63 }
  0x8e   : > { %374 = vmatmul.f32.gmra.mxu0 %v302_v5 }
  0x96   : > { %377 = vmatmul.f32.gmra.mxu0 %v303_v9 }
  0x9e   : > { %380 = vmatmul.f32.gmra.mxu0 %v304_v12 }
  0xa6   : > { %383 = vmatmul.f32.gmra.mxu0 %v305_v15 }
  0xab   : > { %v339_v16 = vpop.f32.mrf.mxu0 }
  0xac   : > { %419 = vmatmul.f32.vlgmr.msra.gmra.mxu1 %v339_v16 }
  0xb3   : > { %v342_v17 = vpop.f32.mrf.mxu0 }
  0xb4   : > { %422 = vmatmul.f32.gmra.mxu1 %v342_v17 }
  0xbb   : > { %v345_v18 = vpop.f32.mrf.mxu0 }
  0xbc   : > { %425 = vmatmul.f32.gmra.mxu1 %v345_v18  ;;  %v1128_v18 = vadd.s32 96, %v979_v33 }
  0xbe   : > { %vm515_vm12 = vcmp.eq.s32.totalorder %v1128_v18, %v981_v34 }
  0xc3   : > { %v348_v19 = vpop.f32.mrf.mxu0 }
  0xc4   : > { %428 = vmatmul.f32.gmra.mxu1 %v348_v19 }
  0xcb   : > { %v351_v20 = vpop.f32.mrf.mxu0 }
  0xcc   : > { %431 = vmatmul.f32.gmra.mxu1 %v351_v20 }
  0xd3   : > { %v354_v21 = vpop.f32.mrf.mxu0 }
  0xd4   : > { %434 = vmatmul.f32.gmra.mxu1 %v354_v21 }
  0xdb   : > { %v357_v22 = vpop.f32.mrf.mxu0 }
  0xdc   : > { %437 = vmatmul.f32.gmra.mxu1 %v357_v22  ;;  %v1137_v22 = vadd.s32 104, %v979_v33 }
  0xde   : > { %vm516_vm13 = vcmp.eq.s32.totalorder %v1137_v22, %v981_v34 }
  0xe3   : > { %v360_v23 = vpop.f32.mrf.mxu0 }
  0xe4   : > { %440 = vmatmul.f32.gmra.mxu1 %v360_v23 }
  0xeb   : > { %v363_v24 = vpop.f32.mrf.mxu0 }
  0xec   : > { %443 = vmatmul.f32.gmra.mxu1 %v363_v24 }
  0xf3   : > { %v366_v25 = vpop.f32.mrf.mxu0 }
  0xf4   : > { %446 = vmatmul.f32.gmra.mxu1 %v366_v25 }
  0xfb   : > { %v369_v26 = vpop.f32.mrf.mxu0 }
  0xfc   : > { %449 = vmatmul.f32.gmra.mxu1 %v369_v26  ;;  %v1146_v26 = vadd.s32 112, %v979_v33 }
  0xfe   : > { %vm517_vm14 = vcmp.eq.s32.totalorder %v1146_v26, %v981_v34 }
 0x103   : > { %v372_v27 = vpop.f32.mrf.mxu0 }
 0x104   : > { %452 = vmatmul.f32.gmra.mxu1 %v372_v27 }
 0x10b   : > { %v375_v28 = vpop.f32.mrf.mxu0 }
 0x10c   : > { %455 = vmatmul.f32.gmra.mxu1 %v375_v28 }
 0x113   : > { %v378_v29 = vpop.f32.mrf.mxu0 }
 0x114   : > { %458 = vmatmul.f32.gmra.mxu1 %v378_v29 }
 0x11b   : > { %v381_v30 = vpop.f32.mrf.mxu0 }
 0x11c   : > { %461 = vmatmul.f32.gmra.mxu1 %v381_v30  ;;  %v1155_v30 = vadd.s32 120, %v979_v33 }
 0x11e   : > { %vm518_vm15 = vcmp.eq.s32.totalorder %v1155_v30, %v981_v34 }
 0x123   : > { %v384_v32 = vpop.f32.mrf.mxu0 }
 0x124   : > { %464 = vmatmul.f32.gmra.mxu1 %v384_v32 }
 0x129   : > { %v420_v35 = vpop.f32.mrf.mxu1 }
 0x12a   : > { %v468_v36 = vand.u32 2147483647, %v420_v35 }
 0x12c   : > { %v994_v37 = vsel %vm503_vm0, 1.0, %v468_v36 }
 0x12d   : > { %535 = vst [vmem:[%s989_s24] sm:$0xff] %v994_v37 }
 0x131   : > { %v423_v39 = vpop.f32.mrf.mxu1 }
 0x132   : > { %v469_v40 = vand.u32 2147483647, %v423_v39 }
 0x134   : > { %v1006_v41 = vsel %vm504_vm1, 1.0, %v469_v40 }
 0x135   : > { %536 = vst [vmem:[%s989_s24 + $0x8] sm:$0xff] %v1006_v41 }
 0x139   : > { %v426_v43 = vpop.f32.mrf.mxu1 }
 0x13a   : > { %v470_v44 = vand.u32 2147483647, %v426_v43 }
 0x13c   : > { %v1018_v45 = vsel %vm505_vm2, 1.0, %v470_v44 }
 0x13d   : > { %537 = vst [vmem:[%s989_s24 + $0x10] sm:$0xff] %v1018_v45 }
 0x141   : > { %v429_v47 = vpop.f32.mrf.mxu1 }
 0x142   : > { %v471_v48 = vand.u32 2147483647, %v429_v47 }
 0x144   : > { %v1030_v49 = vsel %vm506_vm3, 1.0, %v471_v48 }
 0x145   : > { %538 = vst [vmem:[%s989_s24 + $0x18] sm:$0xff] %v1030_v49 }
 0x149   : > { %v432_v51 = vpop.f32.mrf.mxu1 }
 0x14a   : > { %v472_v52 = vand.u32 2147483647, %v432_v51 }
 0x14c   : > { %v1042_v53 = vsel %vm507_vm4, 1.0, %v472_v52 }
 0x14d   : > { %539 = vst [vmem:[%s989_s24 + $0x20] sm:$0xff] %v1042_v53 }
 0x151   : > { %v435_v55 = vpop.f32.mrf.mxu1 }
 0x152   : > { %v473_v56 = vand.u32 2147483647, %v435_v55 }
 0x154   : > { %v1054_v57 = vsel %vm508_vm5, 1.0, %v473_v56 }
 0x155   : > { %540 = vst [vmem:[%s989_s24 + $0x28] sm:$0xff] %v1054_v57 }
 0x159   : > { %v438_v59 = vpop.f32.mrf.mxu1 }
 0x15a   : > { %v474_v60 = vand.u32 2147483647, %v438_v59 }
 0x15c   : > { %v1066_v61 = vsel %vm509_vm6, 1.0, %v474_v60 }
 0x15d   : > { %541 = vst [vmem:[%s989_s24 + $0x30] sm:$0xff] %v1066_v61 }
 0x161   : > { %v441_v63 = vpop.f32.mrf.mxu1 }
 0x162   : > { %v475_v0 = vand.u32 2147483647, %v441_v63 }
 0x164   : > { %v1078_v1 = vsel %vm510_vm7, 1.0, %v475_v0 }
 0x165   : > { %542 = vst [vmem:[%s989_s24 + $0x38] sm:$0xff] %v1078_v1 }
 0x169   : > { %v444_v3 = vpop.f32.mrf.mxu1 }
 0x16a   : > { %v476_v4 = vand.u32 2147483647, %v444_v3 }
 0x16c   : > { %v1090_v5 = vsel %vm511_vm8, 1.0, %v476_v4 }
 0x16d   : > { %543 = vst [vmem:[%s989_s24 + $0x40] sm:$0xff] %v1090_v5 }
 0x171   : > { %v447_v7 = vpop.f32.mrf.mxu1 }
 0x172   : > { %v477_v8 = vand.u32 2147483647, %v447_v7 }
 0x174   : > { %v1102_v9 = vsel %vm512_vm9, 1.0, %v477_v8 }
 0x175   : > { %544 = vst [vmem:[%s989_s24 + $0x48] sm:$0xff] %v1102_v9 }
 0x179   : > { %v450_v11 = vpop.f32.mrf.mxu1 }
 0x17a   : > { %v478_v12 = vand.u32 2147483647, %v450_v11 }
 0x17c   : > { %v1114_v13 = vsel %vm513_vm10, 1.0, %v478_v12 }
 0x17d   : > { %545 = vst [vmem:[%s989_s24 + $0x50] sm:$0xff] %v1114_v13 }
 0x181   : > { %v453_v15 = vpop.f32.mrf.mxu1 }
 0x182   : > { %v479_v16 = vand.u32 2147483647, %v453_v15 }
 0x184   : > { %v530_v17 = vsel %vm514_vm11, 1.0, %v479_v16 }
 0x185   : > { %546 = vst [vmem:[%s989_s24 + $0x58] sm:$0xff] %v530_v17 }
 0x189   : > { %v456_v19 = vpop.f32.mrf.mxu1 }
 0x18a   : > { %v480_v20 = vand.u32 2147483647, %v456_v19 }
 0x18c   : > { %v531_v21 = vsel %vm515_vm12, 1.0, %v480_v20 }
 0x18d   : > { %547 = vst [vmem:[%s989_s24 + $0x60] sm:$0xff] %v531_v21 }
 0x191   : > { %v459_v23 = vpop.f32.mrf.mxu1 }
 0x192   : > { %v481_v24 = vand.u32 2147483647, %v459_v23 }
 0x194   : > { %v532_v25 = vsel %vm516_vm13, 1.0, %v481_v24 }
 0x195   : > { %548 = vst [vmem:[%s989_s24 + $0x68] sm:$0xff] %v532_v25 }
 0x199   : > { %v462_v27 = vpop.f32.mrf.mxu1 }
 0x19a   : > { %v482_v28 = vand.u32 2147483647, %v462_v27 }
 0x19c   : > { %v533_v29 = vsel %vm517_vm14, 1.0, %v482_v28 }
 0x19d   : > { %549 = vst [vmem:[%s989_s24 + $0x70] sm:$0xff] %v533_v29 }
 0x1a1   : > { %v465_v31 = vpop.f32.mrf.mxu1 }
 0x1a2   : > { %v483_v32 = vand.u32 2147483647, %v465_v31 }
 0x1a4   : > { %v534_v35 = vsel %vm518_vm15, 1.0, %v483_v32 }
 0x1a5   : > { %550 = vst [vmem:[%s989_s24 + $0x78] sm:$0xff] %v534_v35  ;;  %551 = vmatpush.xpose.msra.mxu2 %v534_v35  ;;  %767 = vmatpush.xpose.msra.mxu3 %v534_v35 }
 0x1a9   : > { %552 = vmatpush.xpose.msra.mxu2 %v533_v29  ;;  %768 = vmatpush.xpose.msra.mxu3 %v533_v29 }
 0x1ad   : > { %553 = vmatpush.xpose.msra.mxu2 %v532_v25  ;;  %769 = vmatpush.xpose.msra.mxu3 %v532_v25 }
 0x1b1   : > { %554 = vmatpush.xpose.msra.mxu2 %v531_v21  ;;  %770 = vmatpush.xpose.msra.mxu3 %v531_v21 }
 0x1b5   : > { %555 = vmatpush.xpose.msra.mxu2 %v530_v17  ;;  %771 = vmatpush.xpose.msra.mxu3 %v530_v17 }
 0x1b9   : > { %556 = vmatpush.xpose.msra.mxu2 %v1114_v13  ;;  %772 = vmatpush.xpose.msra.mxu3 %v1114_v13 }
 0x1bd   : > { %557 = vmatpush.xpose.msra.mxu2 %v1102_v9  ;;  %773 = vmatpush.xpose.msra.mxu3 %v1102_v9 }
 0x1c1   : > { %558 = vmatpush.xpose.msra.mxu2 %v1090_v5  ;;  %774 = vmatpush.xpose.msra.mxu3 %v1090_v5 }
 0x1c5   : > { %559 = vmatpush.xpose.msra.mxu2 %v1078_v1  ;;  %775 = vmatpush.xpose.msra.mxu3 %v1078_v1 }
 0x1c9   : > { %560 = vmatpush.xpose.msra.mxu2 %v1066_v61  ;;  %776 = vmatpush.xpose.msra.mxu3 %v1066_v61 }
 0x1cd   : > { %561 = vmatpush.xpose.msra.mxu2 %v1054_v57  ;;  %777 = vmatpush.xpose.msra.mxu3 %v1054_v57 }
 0x1d1   : > { %562 = vmatpush.xpose.msra.mxu2 %v1042_v53  ;;  %778 = vmatpush.xpose.msra.mxu3 %v1042_v53 }
 0x1d5   : > { %563 = vmatpush.xpose.msra.mxu2 %v1030_v49  ;;  %779 = vmatpush.xpose.msra.mxu3 %v1030_v49 }
 0x1d9   : > { %564 = vmatpush.xpose.msra.mxu2 %v1018_v45  ;;  %780 = vmatpush.xpose.msra.mxu3 %v1018_v45 }
 0x1dd   : > { %565 = vmatpush.xpose.msra.mxu2 %v1006_v41  ;;  %781 = vmatpush.xpose.msra.mxu3 %v1006_v41 }
 0x1e1   : > { %566 = vmatpush.xpose.msra.mxu2 %v994_v37  ;;  %782 = vmatpush.xpose.msra.mxu3 %v994_v37 }
 0x1e4   : > { %567 = vmatmul.f32.vlgmr.msra.gmra.mxu2 %v994_v37  ;;  %597 = vmatmul.f32.vlgmr.msra.gmra.mxu3 %v1114_v13 }
 0x1ec   : > { %570 = vmatmul.f32.gmra.mxu2 %v1006_v41  ;;  %600 = vmatmul.f32.gmra.mxu3 %v530_v17 }
 0x1f4   : > { %573 = vmatmul.f32.gmra.mxu2 %v1018_v45  ;;  %603 = vmatmul.f32.gmra.mxu3 %v531_v21 }
 0x1fc   : > { %576 = vmatmul.f32.gmra.mxu2 %v1030_v49  ;;  %606 = vmatmul.f32.gmra.mxu3 %v532_v25 }
 0x204   : > { %579 = vmatmul.f32.gmra.mxu2 %v1042_v53  ;;  %609 = vmatmul.f32.gmra.mxu3 %v533_v29 }
 0x20c   : > { %582 = vmatmul.f32.gmra.mxu2 %v1054_v57  ;;  %612 = vmatmul.f32.gmra.mxu3 %v534_v35 }
 0x214   : > { %585 = vmatmul.f32.gmra.mxu2 %v1066_v61 }
 0x21c   : > { %588 = vmatmul.f32.gmra.mxu2 %v1078_v1 }
 0x224   : > { %591 = vmatmul.f32.gmra.mxu2 %v1090_v5 }
 0x22c   : > { %594 = vmatmul.f32.gmra.mxu2 %v1102_v9 }
 0x267   : > { %v568_v36 = vpop.f32.mrf.mxu2  ;;  %v598_v37 = vpop.f32.mrf.mxu3 }
 0x268   : > { %v616_v39 = vsel %vm503_vm0, 1.0, %v568_v36  ;;  %v626_v40 = vsel %vm513_vm10, 1.0, %v598_v37 }
 0x269   : > { %632 = vst [vmem:[%s1200_s27] sm:$0xff] %v616_v39 }
 0x26a   : > { %642 = vst [vmem:[%s1200_s27 + $0x50] sm:$0xff] %v626_v40 }
 0x26f   : > { %v571_v41 = vpop.f32.mrf.mxu2  ;;  %v601_v43 = vpop.f32.mrf.mxu3 }
 0x270   : > { %v617_v44 = vsel %vm504_vm1, 1.0, %v571_v41  ;;  %v627_v33 = vsel %vm514_vm11, 1.0, %v601_v43 }
 0x271   : > { %633 = vst [vmem:[%s1200_s27 + $0x8] sm:$0xff] %v617_v44 }
 0x272   : > { %643 = vst [vmem:[%s1200_s27 + $0x58] sm:$0xff] %v627_v33 }
 0x277   : > { %v574_v45 = vpop.f32.mrf.mxu2  ;;  %v604_v47 = vpop.f32.mrf.mxu3 }
 0x278   : > { %v618_v48 = vsel %vm505_vm2, 1.0, %v574_v45  ;;  %v628_v38 = vsel %vm515_vm12, 1.0, %v604_v47 }
 0x279   : > { %634 = vst [vmem:[%s1200_s27 + $0x10] sm:$0xff] %v618_v48 }
 0x27a   : > { %644 = vst [vmem:[%s1200_s27 + $0x60] sm:$0xff] %v628_v38 }
 0x27f   : > { %v577_v49 = vpop.f32.mrf.mxu2  ;;  %v607_v51 = vpop.f32.mrf.mxu3 }
 0x280   : > { %v619_v52 = vsel %vm506_vm3, 1.0, %v577_v49  ;;  %v629_v42 = vsel %vm516_vm13, 1.0, %v607_v51 }
 0x281   : > { %635 = vst [vmem:[%s1200_s27 + $0x18] sm:$0xff] %v619_v52 }
 0x282   : > { %645 = vst [vmem:[%s1200_s27 + $0x68] sm:$0xff] %v629_v42 }
 0x287   : > { %v580_v53 = vpop.f32.mrf.mxu2  ;;  %v610_v55 = vpop.f32.mrf.mxu3 }
 0x288   : > { %v620_v56 = vsel %vm507_vm4, 1.0, %v580_v53  ;;  %v630_v46 = vsel %vm517_vm14, 1.0, %v610_v55 }
 0x289   : > { %636 = vst [vmem:[%s1200_s27 + $0x20] sm:$0xff] %v620_v56 }
 0x28a   : > { %646 = vst [vmem:[%s1200_s27 + $0x70] sm:$0xff] %v630_v46 }
 0x28f   : > { %v583_v57 = vpop.f32.mrf.mxu2  ;;  %v613_v59 = vpop.f32.mrf.mxu3 }
 0x290   : > { %v621_v60 = vsel %vm508_vm5, 1.0, %v583_v57  ;;  %v631_v50 = vsel %vm518_vm15, 1.0, %v613_v59 }
 0x291   : > { %637 = vst [vmem:[%s1200_s27 + $0x28] sm:$0xff] %v621_v60 }
 0x292   : > { %647 = vst [vmem:[%s1200_s27 + $0x78] sm:$0xff] %v631_v50 }
 0x297   : > { %v586_v61 = vpop.f32.mrf.mxu2 }
 0x298   : > { %v622_v63 = vsel %vm509_vm6, 1.0, %v586_v61 }
 0x299   : > { %638 = vst [vmem:[%s1200_s27 + $0x30] sm:$0xff] %v622_v63 }
 0x29f   : > { %v589_v0 = vpop.f32.mrf.mxu2 }
 0x2a0   : > { %v623_v1 = vsel %vm510_vm7, 1.0, %v589_v0 }
 0x2a1   : > { %639 = vst [vmem:[%s1200_s27 + $0x38] sm:$0xff] %v623_v1 }
 0x2a7   : > { %v592_v54 = vpop.f32.mrf.mxu2 }
 0x2a8   : > { %v624_v3 = vsel %vm511_vm8, 1.0, %v592_v54 }
 0x2a9   : > { %640 = vst [vmem:[%s1200_s27 + $0x40] sm:$0xff] %v624_v3 }
 0x2af   : > { %v595_v4 = vpop.f32.mrf.mxu2 }
 0x2b0   : > { %v625_v5 = vsel %vm512_vm9, 1.0, %v595_v4 }
 0x2b1   : > { %641 = vst [vmem:[%s1200_s27 + $0x48] sm:$0xff] %v625_v5 }
 0x2b2 PF: > { %s16_s18 = sadd.s32 1, %s797_s18  }
 0x2b3   : > { %p13_p4 = scmp.ge.s32.totalorder %s16_s18, 4  }
 0x2b5   :  { %15 = sbr.rel (!%p13_p4) target bundleno = 1 (0x1), region = 81 }

</bundles_post_ra>
